<compile_context>
chip_gen: v7x
topology: tpu7x:2x2x1
jax: 0.10.0
libtpu: 0.0.40
codegen_flags: <defaults>
</compile_context>

<pallas_src>
import numpy as np
import jax
import jax.numpy as jnp
from jax import lax
from jax.experimental import pallas as pl
from jax.experimental.pallas import tpu as pltpu


# ---------------------------------------------------------------------------
# Host-side constant builders (masks precomputed once, not per grid step).
# ---------------------------------------------------------------------------
def _tap_masks(H, W, dil, BT):
    """Destination-validity masks for the 9 taps of a 'same' 3x3 conv at
    dilation `dil` on the flat (H*W) lane layout, tiled over BT images."""
    HW = H * W
    hh = np.arange(HW, dtype=np.int64) // W
    ww = np.arange(HW, dtype=np.int64) % W
    rows = []
    for dh in (-1, 0, 1):
        for dw in (-1, 0, 1):
            h2 = hh + dil * dh
            w2 = ww + dil * dw
            ok = (h2 >= 0) & (h2 < H) & (w2 >= 0) & (w2 < W)
            rows.append(ok.astype(np.float32))
    m = np.stack(rows, axis=0)                       # (9, HW)
    return jnp.asarray(np.tile(m, (1, BT)))          # (9, BT*HW)


def _parity_masks(H, W, BT):
    HW = H * W
    hh = np.arange(HW, dtype=np.int64) // W
    ww = np.arange(HW, dtype=np.int64) % W
    par = np.stack([(ww % 2 == 0).astype(np.float32),     # w_even
                    (hh % 2 == 0).astype(np.float32)],    # h_even
                   axis=0)                                 # (2, HW)
    return jnp.asarray(np.tile(par, (1, BT)))              # (2, BT*HW)


def _tap_shifts(W, dil, L):
    # want result[.., p] = a[.., p + dil*(dh*W+dw)]  ->  roll by
    # -(dil*(dh*W+dw)), normalized non-negative for pltpu.roll.
    return [(-(dil * (dh * W + dw))) % L
            for dh in (-1, 0, 1) for dw in (-1, 0, 1)]


# ---------------------------------------------------------------------------
# Fused ensemble kernel (one batch tile of BT images per grid step).
# Activation layout inside the kernel: (channels, BT*H*W) -> channels on
# sublanes, flat (image, spatial) on lanes (lane-dense, multiple of 128).
# ---------------------------------------------------------------------------
def _make_fused_kernel(H, W, BT, use_bf16):
    HW = H * W
    L = BT * HW
    s1 = _tap_shifts(W, 1, L)   # ordinary 3x3 taps
    s2 = _tap_shifts(W, 2, L)   # dilation-2 taps == 3x3 conv on pooled grid
    mm_dtype = jnp.bfloat16 if use_bf16 else jnp.float32

    def kernel(x_ref, m1_ref, m2_ref, par_ref,
               ww_ref, wb_ref,            # wiener 3x3
               e1w_ref, e1b_ref,          # enc1 3x3
               e2w_ref, e2b_ref,          # enc2 3x3 (on pooled grid)
               dwu_ref, dws_ref, db_ref,  # dec 3x3 (weight split: up | skip)
               ow_ref, ob_ref,            # out 1x1
               o_ref):

        def mm(w, p):
            return jnp.dot(w.astype(mm_dtype), p.astype(mm_dtype),
                           preferred_element_type=jnp.float32)

        def conv_taps(a, w_ref_, m_ref_, shifts, acc=None):
            # Per-tap accumulation: only one shifted/masked piece live at a
            # time; no sublane-axis concatenate / relayout.  Center tap needs
            # neither roll nor mask (its mask is all-ones).
            c = mm(w_ref_[4], a)
            acc = c if acc is None else acc + c
            for t in range(9):
                if t == 4:
                    continue
                piece = pltpu.roll(a, shifts[t], axis=1)
                piece = piece * m_ref_[pl.ds(t, 1), :]
                acc = acc + mm(w_ref_[t], piece)
            return acc

        def conv3x3(a, w_ref_, b_ref_, m_ref_, shifts, relu):
            y = conv_taps(a, w_ref_, m_ref_, shifts) + b_ref_[...]
            return jnp.maximum(y, 0.0) if relu else y

        x = x_ref[...]                                       # (C, BT*HW)
        w_even = par_ref[pl.ds(0, 1), :]                     # (1, BT*HW)
        h_even = par_ref[pl.ds(1, 1), :]

        def pool2x2_full(a):
            # p[c, p] = max over the 2x2 block containing pixel p, kept
            # broadcast at full resolution (nearest x2 upsample == identity).
            # Parity pairings never cross a row or image seam (even H, W),
            # so the batched flat lane layout stays correct.
            right = pltpu.roll(a, L - 1, axis=1)             # a[.., p+1]
            left = pltpu.roll(a, 1, axis=1)                  # a[.., p-1]
            t = (w_even * jnp.maximum(a, right)
                 + (1.0 - w_even) * jnp.maximum(a, left))
            down = pltpu.roll(t, L - W, axis=1)              # t[.., p+W]
            up_ = pltpu.roll(t, W, axis=1)                   # t[.., p-W]
            return (h_even * jnp.maximum(t, down)
                    + (1.0 - h_even) * jnp.maximum(t, up_))

        # ---- wiener_model: 3x3 conv, no activation ----
        wiener = conv3x3(x, ww_ref, wb_ref, m1_ref, s1, relu=False)   # (C, L)

        # ---- unet_model ----
        e1 = conv3x3(wiener, e1w_ref, e1b_ref, m1_ref, s1, relu=True)  # (F, L)
        p1f = pool2x2_full(e1)                                          # (F, L)
        # enc2 on the pooled grid == dilation-2 conv on the block-constant
        # pooled map; nearest x2 upsample is then a no-op.
        up = conv3x3(p1f, e2w_ref, e2b_ref, m2_ref, s2, relu=True)     # (2F, L)
        # dec conv on concat([up, e1]): channel concat folded into a weight
        # split, so no concatenated tensor is materialized.
        d1 = conv_taps(up, dwu_ref, m1_ref, s1)
        d1 = conv_taps(e1, dws_ref, m1_ref, s1, acc=d1)
        d1 = jnp.maximum(d1 + db_ref[...], 0.0)                         # (F, L)
        # 1x1 output conv
        out = mm(ow_ref[...], d1) + ob_ref[...]                         # (C, L)

        o_ref[...] = out.astype(o_ref.dtype)

    return kernel


# ---------------------------------------------------------------------------
# Host-side weight re-layout + the fused forward wrapper.
# ---------------------------------------------------------------------------
def _to_taps(w):
    # (KH, KW, Cin, Cout) -> (KH*KW, Cout, Cin): 9 per-tap weight blocks in
    # the kernel's tap order (dh outer, dw inner).
    kh, kw, cin, cout = w.shape
    return jnp.transpose(w, (0, 1, 3, 2)).reshape(kh * kw, cout, cin)


def _to_wmat(w):
    # (1, 1, Cin, Cout) -> (Cout, Cin) for the 1x1 conv.
    kh, kw, cin, cout = w.shape
    return jnp.transpose(w, (3, 0, 1, 2)).reshape(cout, kh * kw * cin)


def _to_bcol(b):
    return b.reshape(-1, 1)


def my_ensemble_forward_pallas(params, x_nchw, *, use_bf16=False):
    B, C, H, W = x_nchw.shape
    assert H % 2 == 0 and W % 2 == 0, "maxpool/upsample assume even H, W"
    HW = H * W
    F = params["enc1"][0].shape[-1]

    # Batch tile: fold images into the matmul lane dim to amortize per-step
    # fixed cost + roll/mask work, but keep the grid extent >= 2 so v7x's
    # two TensorCores both stay busy ("parallel" grid axis).
    BT = B // 2 if (B >= 2 and B % 2 == 0) else 1
    G = B // BT
    L = BT * HW

    ww, wb = params["wiener"]
    e1w, e1b = params["enc1"]
    e2w, e2b = params["enc2"]
    dw, db = params["dec"]
    ow, ob = params["out"]

    # skip concat order is [up (2F channels), e1 (F channels)]
    dwu, dws = dw[:, :, :2 * F, :], dw[:, :, 2 * F:, :]

    # lane-dense HBM layout: (C, B*H*W); one XLA transpose host-side.
    x_flat = jnp.transpose(x_nchw.reshape(B, C, HW), (1, 0, 2)).reshape(C, B * HW)

    m1 = _tap_masks(H, W, 1, BT)          # (9, L)
    m2 = _tap_masks(H, W, 2, BT)          # (9, L)
    par = _parity_masks(H, W, BT)         # (2, L)

    args = (x_flat, m1, m2, par,
            _to_taps(ww), _to_bcol(wb),
            _to_taps(e1w), _to_bcol(e1b),
            _to_taps(e2w), _to_bcol(e2b),
            _to_taps(dwu), _to_taps(dws), _to_bcol(db),
            _to_wmat(ow), _to_bcol(ob))

    def _const_spec(a):
        nd = a.ndim
        return pl.BlockSpec(a.shape, lambda b, _nd=nd: (0,) * _nd)

    in_specs = [pl.BlockSpec((C, L), lambda b: (0, b))]
    in_specs += [_const_spec(a) for a in args[1:]]

    out_flat = pl.pallas_call(
        _make_fused_kernel(H, W, BT, use_bf16),
        out_shape=jax.ShapeDtypeStruct((C, B * HW), x_nchw.dtype),
        grid=(G,),
        in_specs=in_specs,
        out_specs=pl.BlockSpec((C, L), lambda b: (0, b)),
        compiler_params=pltpu.CompilerParams(
            dimension_semantics=("parallel",)),   # shard batch tiles across TCs
    )(*args)

    out = out_flat.reshape(C, B, HW).transpose(1, 0, 2).reshape(B, C, H, W)
    return out


# ---------------------------------------------------------------------------
# Parameter init + pure-JAX reference (correctness check only).
# ---------------------------------------------------------------------------
def init_conv_params(key, kh, kw, cin, cout):
    kw_key, kb_key = jax.random.split(key)
    fan_in = kh * kw * cin
    w = jax.random.normal(kw_key, (kh, kw, cin, cout), jnp.float32)
    w = w * (1.0 / jnp.sqrt(fan_in))
    b = 0.01 * jax.random.normal(kb_key, (cout,), jnp.float32)
    return w, b


def init_ensemble_params(key, C, F):
    keys = jax.random.split(key, 5)
    return {
        "wiener": init_conv_params(keys[0], 3, 3, C, C),
        "enc1":   init_conv_params(keys[1], 3, 3, C, F),
        "enc2":   init_conv_params(keys[2], 3, 3, F, 2 * F),
        "dec":    init_conv_params(keys[3], 3, 3, 3 * F, F),
        "out":    init_conv_params(keys[4], 1, 1, F, C),
    }


def conv2d_ref(x, w, b, *, relu=False):
    kh, kw = w.shape[0], w.shape[1]
    out = lax.conv_general_dilated(
        x, w, window_strides=(1, 1),
        padding=[((kh - 1) // 2,) * 2, ((kw - 1) // 2,) * 2],
        dimension_numbers=("NHWC", "HWIO", "NHWC"),
        precision=lax.Precision.HIGHEST)
    out = out + b.reshape(1, 1, 1, -1)
    return jnp.maximum(out, 0.0) if relu else out


def maxpool2x2(x):
    B, H, W, C = x.shape
    return x.reshape(B, H // 2, 2, W // 2, 2, C).max(axis=(2, 4))


def upsample2x_nearest(x):
    return jnp.repeat(jnp.repeat(x, 2, axis=1), 2, axis=2)


def my_ensemble_forward_ref(params, x_nchw):
    x = jnp.transpose(x_nchw, (0, 2, 3, 1))                  # NHWC
    wiener = conv2d_ref(x, *params["wiener"], relu=False)
    e1 = conv2d_ref(wiener, *params["enc1"], relu=True)
    p1 = maxpool2x2(e1)
    e2 = conv2d_ref(p1, *params["enc2"], relu=True)
    up = upsample2x_nearest(e2)
    cat = jnp.concatenate([up, e1], axis=-1)
    d1 = conv2d_ref(cat, *params["dec"], relu=True)
    out = conv2d_ref(d1, *params["out"], relu=False)
    return jnp.transpose(out, (0, 3, 1, 2))                  # back to NCHW


if __name__ == "__main__":
    B, C, H, W = 2, 4, 16, 16
    F_base = 8

    key = jax.random.PRNGKey(0)
    key_x, key_p = jax.random.split(key)
    x = jax.random.normal(key_x, (B, C, H, W), jnp.float32)   # NCHW input
    params = init_ensemble_params(key_p, C, F_base)

    # use_bf16=True is the v6e/v7x option (halves vreg/VMEM pressure); kept
    # off here so the f32 reference check below stays within 1e-3.
    fwd_pallas = jax.jit(lambda p, a: my_ensemble_forward_pallas(p, a))
    out = jax.block_until_ready(fwd_pallas(params, x))

    ref = jax.block_until_ready(jax.jit(my_ensemble_forward_ref)(params, x))
    assert out.shape == (B, C, H, W)
    max_err = float(jnp.max(jnp.abs(out - ref)))
    assert jnp.allclose(out, ref, rtol=1e-3, atol=1e-3), max_err

    print("KERNEL_OK")
</pallas_src>

<mosaic_0001>
module attributes {stable_mosaic.version = 11 : i64} {
  func.func @kernel(%arg0: i32, %arg1: memref<4x256xf32, #tpu.memory_space<vmem>>, %arg2: memref<9x256xf32, #tpu.memory_space<vmem>>, %arg3: memref<9x256xf32, #tpu.memory_space<vmem>>, %arg4: memref<2x256xf32, #tpu.memory_space<vmem>>, %arg5: memref<9x4x4xf32, #tpu.memory_space<vmem>>, %arg6: memref<4x1xf32, #tpu.memory_space<vmem>>, %arg7: memref<9x8x4xf32, #tpu.memory_space<vmem>>, %arg8: memref<8x1xf32, #tpu.memory_space<vmem>>, %arg9: memref<9x16x8xf32, #tpu.memory_space<vmem>>, %arg10: memref<16x1xf32, #tpu.memory_space<vmem>>, %arg11: memref<9x8x16xf32, #tpu.memory_space<vmem>>, %arg12: memref<9x8x8xf32, #tpu.memory_space<vmem>>, %arg13: memref<8x1xf32, #tpu.memory_space<vmem>>, %arg14: memref<4x8xf32, #tpu.memory_space<vmem>>, %arg15: memref<4x1xf32, #tpu.memory_space<vmem>>, %arg16: memref<4x256xf32, #tpu.memory_space<vmem>>) attributes {dimension_semantics = [#tpu.dimension_semantics<parallel>], iteration_bounds = array<i64: 2>, scalar_prefetch = 0 : i64, scratch_operands = 0 : i64, tpu.core_type = #tpu.core_type<tc>, window_params = [{transform_indices = @transform_0, window_bounds = array<i64: 4, 256>}, {pipeline_mode = #tpu.pipeline_mode<synchronous>, transform_indices = @transform_1, window_bounds = array<i64: 9, 256>}, {pipeline_mode = #tpu.pipeline_mode<synchronous>, transform_indices = @transform_2, window_bounds = array<i64: 9, 256>}, {pipeline_mode = #tpu.pipeline_mode<synchronous>, transform_indices = @transform_3, window_bounds = array<i64: 2, 256>}, {pipeline_mode = #tpu.pipeline_mode<synchronous>, transform_indices = @transform_4, window_bounds = array<i64: 9, 4, 4>}, {pipeline_mode = #tpu.pipeline_mode<synchronous>, transform_indices = @transform_5, window_bounds = array<i64: 4, 1>}, {pipeline_mode = #tpu.pipeline_mode<synchronous>, transform_indices = @transform_6, window_bounds = array<i64: 9, 8, 4>}, {pipeline_mode = #tpu.pipeline_mode<synchronous>, transform_indices = @transform_7, window_bounds = array<i64: 8, 1>}, {pipeline_mode = #tpu.pipeline_mode<synchronous>, transform_indices = @transform_8, window_bounds = array<i64: 9, 16, 8>}, {pipeline_mode = #tpu.pipeline_mode<synchronous>, transform_indices = @transform_9, window_bounds = array<i64: 16, 1>}, {pipeline_mode = #tpu.pipeline_mode<synchronous>, transform_indices = @transform_10, window_bounds = array<i64: 9, 8, 16>}, {pipeline_mode = #tpu.pipeline_mode<synchronous>, transform_indices = @transform_11, window_bounds = array<i64: 9, 8, 8>}, {pipeline_mode = #tpu.pipeline_mode<synchronous>, transform_indices = @transform_12, window_bounds = array<i64: 8, 1>}, {pipeline_mode = #tpu.pipeline_mode<synchronous>, transform_indices = @transform_13, window_bounds = array<i64: 4, 8>}, {pipeline_mode = #tpu.pipeline_mode<synchronous>, transform_indices = @transform_14, window_bounds = array<i64: 4, 1>}, {transform_indices = @transform_15, window_bounds = array<i64: 4, 256>}]} {
    %c0 = arith.constant 0 : index
    %c0_0 = arith.constant 0 : index
    %0 = vector.load %arg1[%c0, %c0_0] : memref<4x256xf32, #tpu.memory_space<vmem>>, vector<4x256xf32>
    %c0_1 = arith.constant 0 : index
    %c0_2 = arith.constant 0 : index
    %1 = vector.load %arg4[%c0_1, %c0_2] : memref<2x256xf32, #tpu.memory_space<vmem>>, vector<1x256xf32>
    %c1 = arith.constant 1 : index
    %c0_3 = arith.constant 0 : index
    %2 = vector.load %arg4[%c1, %c0_3] : memref<2x256xf32, #tpu.memory_space<vmem>>, vector<1x256xf32>
    %c4 = arith.constant 4 : index
    %c0_4 = arith.constant 0 : index
    %c0_5 = arith.constant 0 : index
    %3 = vector.load %arg5[%c4, %c0_4, %c0_5] : memref<9x4x4xf32, #tpu.memory_space<vmem>>, vector<1x4x4xf32>
    %4 = vector.shape_cast %3 : vector<1x4x4xf32> to vector<4x4xf32>
    %cst = arith.constant dense<0.000000e+00> : vector<4x256xf32>
    %5 = tpu.matmul %4, %0, %cst {dimension_numbers = #tpu.dot_dimension_numbers<[1], [0], [0], [1], [0, 0, 1, 1], [], []>} : vector<4x4xf32>, vector<4x256xf32>, vector<4x256xf32> -> vector<4x256xf32>
    %c17_i32 = arith.constant 17 : i32
    %6 = tpu.dynamic_rotate %0 by %c17_i32 dim 1 : vector<4x256xf32>, i32 -> vector<4x256xf32>
    %c0_6 = arith.constant 0 : index
    %c0_7 = arith.constant 0 : index
    %7 = vector.load %arg2[%c0_6, %c0_7] : memref<9x256xf32, #tpu.memory_space<vmem>>, vector<1x256xf32>
    %8 = vector.broadcast %7 : vector<1x256xf32> to vector<4x256xf32>
    %9 = arith.mulf %6, %8 : vector<4x256xf32>
    %c0_8 = arith.constant 0 : index
    %c0_9 = arith.constant 0 : index
    %c0_10 = arith.constant 0 : index
    %10 = vector.load %arg5[%c0_8, %c0_9, %c0_10] : memref<9x4x4xf32, #tpu.memory_space<vmem>>, vector<1x4x4xf32>
    %11 = vector.shape_cast %10 : vector<1x4x4xf32> to vector<4x4xf32>
    %cst_11 = arith.constant dense<0.000000e+00> : vector<4x256xf32>
    %12 = tpu.matmul %11, %9, %cst_11 {dimension_numbers = #tpu.dot_dimension_numbers<[1], [0], [0], [1], [0, 0, 1, 1], [], []>} : vector<4x4xf32>, vector<4x256xf32>, vector<4x256xf32> -> vector<4x256xf32>
    %13 = arith.addf %5, %12 : vector<4x256xf32>
    %c16_i32 = arith.constant 16 : i32
    %14 = tpu.dynamic_rotate %0 by %c16_i32 dim 1 : vector<4x256xf32>, i32 -> vector<4x256xf32>
    %c1_12 = arith.constant 1 : index
    %c0_13 = arith.constant 0 : index
    %15 = vector.load %arg2[%c1_12, %c0_13] : memref<9x256xf32, #tpu.memory_space<vmem>>, vector<1x256xf32>
    %16 = vector.broadcast %15 : vector<1x256xf32> to vector<4x256xf32>
    %17 = arith.mulf %14, %16 : vector<4x256xf32>
    %c1_14 = arith.constant 1 : index
    %c0_15 = arith.constant 0 : index
    %c0_16 = arith.constant 0 : index
    %18 = vector.load %arg5[%c1_14, %c0_15, %c0_16] : memref<9x4x4xf32, #tpu.memory_space<vmem>>, vector<1x4x4xf32>
    %19 = vector.shape_cast %18 : vector<1x4x4xf32> to vector<4x4xf32>
    %cst_17 = arith.constant dense<0.000000e+00> : vector<4x256xf32>
    %20 = tpu.matmul %19, %17, %cst_17 {dimension_numbers = #tpu.dot_dimension_numbers<[1], [0], [0], [1], [0, 0, 1, 1], [], []>} : vector<4x4xf32>, vector<4x256xf32>, vector<4x256xf32> -> vector<4x256xf32>
    %21 = arith.addf %13, %20 : vector<4x256xf32>
    %c15_i32 = arith.constant 15 : i32
    %22 = tpu.dynamic_rotate %0 by %c15_i32 dim 1 : vector<4x256xf32>, i32 -> vector<4x256xf32>
    %c2 = arith.constant 2 : index
    %c0_18 = arith.constant 0 : index
    %23 = vector.load %arg2[%c2, %c0_18] : memref<9x256xf32, #tpu.memory_space<vmem>>, vector<1x256xf32>
    %24 = vector.broadcast %23 : vector<1x256xf32> to vector<4x256xf32>
    %25 = arith.mulf %22, %24 : vector<4x256xf32>
    %c2_19 = arith.constant 2 : index
    %c0_20 = arith.constant 0 : index
    %c0_21 = arith.constant 0 : index
    %26 = vector.load %arg5[%c2_19, %c0_20, %c0_21] : memref<9x4x4xf32, #tpu.memory_space<vmem>>, vector<1x4x4xf32>
    %27 = vector.shape_cast %26 : vector<1x4x4xf32> to vector<4x4xf32>
    %cst_22 = arith.constant dense<0.000000e+00> : vector<4x256xf32>
    %28 = tpu.matmul %27, %25, %cst_22 {dimension_numbers = #tpu.dot_dimension_numbers<[1], [0], [0], [1], [0, 0, 1, 1], [], []>} : vector<4x4xf32>, vector<4x256xf32>, vector<4x256xf32> -> vector<4x256xf32>
    %29 = arith.addf %21, %28 : vector<4x256xf32>
    %c1_i32 = arith.constant 1 : i32
    %30 = tpu.dynamic_rotate %0 by %c1_i32 dim 1 : vector<4x256xf32>, i32 -> vector<4x256xf32>
    %c3 = arith.constant 3 : index
    %c0_23 = arith.constant 0 : index
    %31 = vector.load %arg2[%c3, %c0_23] : memref<9x256xf32, #tpu.memory_space<vmem>>, vector<1x256xf32>
    %32 = vector.broadcast %31 : vector<1x256xf32> to vector<4x256xf32>
    %33 = arith.mulf %30, %32 : vector<4x256xf32>
    %c3_24 = arith.constant 3 : index
    %c0_25 = arith.constant 0 : index
    %c0_26 = arith.constant 0 : index
    %34 = vector.load %arg5[%c3_24, %c0_25, %c0_26] : memref<9x4x4xf32, #tpu.memory_space<vmem>>, vector<1x4x4xf32>
    %35 = vector.shape_cast %34 : vector<1x4x4xf32> to vector<4x4xf32>
    %cst_27 = arith.constant dense<0.000000e+00> : vector<4x256xf32>
    %36 = tpu.matmul %35, %33, %cst_27 {dimension_numbers = #tpu.dot_dimension_numbers<[1], [0], [0], [1], [0, 0, 1, 1], [], []>} : vector<4x4xf32>, vector<4x256xf32>, vector<4x256xf32> -> vector<4x256xf32>
    %37 = arith.addf %29, %36 : vector<4x256xf32>
    %c255_i32 = arith.constant 255 : i32
    %38 = tpu.dynamic_rotate %0 by %c255_i32 dim 1 : vector<4x256xf32>, i32 -> vector<4x256xf32>
    %c5 = arith.constant 5 : index
    %c0_28 = arith.constant 0 : index
    %39 = vector.load %arg2[%c5, %c0_28] : memref<9x256xf32, #tpu.memory_space<vmem>>, vector<1x256xf32>
    %40 = vector.broadcast %39 : vector<1x256xf32> to vector<4x256xf32>
    %41 = arith.mulf %38, %40 : vector<4x256xf32>
    %c5_29 = arith.constant 5 : index
    %c0_30 = arith.constant 0 : index
    %c0_31 = arith.constant 0 : index
    %42 = vector.load %arg5[%c5_29, %c0_30, %c0_31] : memref<9x4x4xf32, #tpu.memory_space<vmem>>, vector<1x4x4xf32>
    %43 = vector.shape_cast %42 : vector<1x4x4xf32> to vector<4x4xf32>
    %cst_32 = arith.constant dense<0.000000e+00> : vector<4x256xf32>
    %44 = tpu.matmul %43, %41, %cst_32 {dimension_numbers = #tpu.dot_dimension_numbers<[1], [0], [0], [1], [0, 0, 1, 1], [], []>} : vector<4x4xf32>, vector<4x256xf32>, vector<4x256xf32> -> vector<4x256xf32>
    %45 = arith.addf %37, %44 : vector<4x256xf32>
    %c241_i32 = arith.constant 241 : i32
    %46 = tpu.dynamic_rotate %0 by %c241_i32 dim 1 : vector<4x256xf32>, i32 -> vector<4x256xf32>
    %c6 = arith.constant 6 : index
    %c0_33 = arith.constant 0 : index
    %47 = vector.load %arg2[%c6, %c0_33] : memref<9x256xf32, #tpu.memory_space<vmem>>, vector<1x256xf32>
    %48 = vector.broadcast %47 : vector<1x256xf32> to vector<4x256xf32>
    %49 = arith.mulf %46, %48 : vector<4x256xf32>
    %c6_34 = arith.constant 6 : index
    %c0_35 = arith.constant 0 : index
    %c0_36 = arith.constant 0 : index
    %50 = vector.load %arg5[%c6_34, %c0_35, %c0_36] : memref<9x4x4xf32, #tpu.memory_space<vmem>>, vector<1x4x4xf32>
    %51 = vector.shape_cast %50 : vector<1x4x4xf32> to vector<4x4xf32>
    %cst_37 = arith.constant dense<0.000000e+00> : vector<4x256xf32>
    %52 = tpu.matmul %51, %49, %cst_37 {dimension_numbers = #tpu.dot_dimension_numbers<[1], [0], [0], [1], [0, 0, 1, 1], [], []>} : vector<4x4xf32>, vector<4x256xf32>, vector<4x256xf32> -> vector<4x256xf32>
    %53 = arith.addf %45, %52 : vector<4x256xf32>
    %c240_i32 = arith.constant 240 : i32
    %54 = tpu.dynamic_rotate %0 by %c240_i32 dim 1 : vector<4x256xf32>, i32 -> vector<4x256xf32>
    %c7 = arith.constant 7 : index
    %c0_38 = arith.constant 0 : index
    %55 = vector.load %arg2[%c7, %c0_38] : memref<9x256xf32, #tpu.memory_space<vmem>>, vector<1x256xf32>
    %56 = vector.broadcast %55 : vector<1x256xf32> to vector<4x256xf32>
    %57 = arith.mulf %54, %56 : vector<4x256xf32>
    %c7_39 = arith.constant 7 : index
    %c0_40 = arith.constant 0 : index
    %c0_41 = arith.constant 0 : index
    %58 = vector.load %arg5[%c7_39, %c0_40, %c0_41] : memref<9x4x4xf32, #tpu.memory_space<vmem>>, vector<1x4x4xf32>
    %59 = vector.shape_cast %58 : vector<1x4x4xf32> to vector<4x4xf32>
    %cst_42 = arith.constant dense<0.000000e+00> : vector<4x256xf32>
    %60 = tpu.matmul %59, %57, %cst_42 {dimension_numbers = #tpu.dot_dimension_numbers<[1], [0], [0], [1], [0, 0, 1, 1], [], []>} : vector<4x4xf32>, vector<4x256xf32>, vector<4x256xf32> -> vector<4x256xf32>
    %61 = arith.addf %53, %60 : vector<4x256xf32>
    %c239_i32 = arith.constant 239 : i32
    %62 = tpu.dynamic_rotate %0 by %c239_i32 dim 1 : vector<4x256xf32>, i32 -> vector<4x256xf32>
    %c8 = arith.constant 8 : index
    %c0_43 = arith.constant 0 : index
    %63 = vector.load %arg2[%c8, %c0_43] : memref<9x256xf32, #tpu.memory_space<vmem>>, vector<1x256xf32>
    %64 = vector.broadcast %63 : vector<1x256xf32> to vector<4x256xf32>
    %65 = arith.mulf %62, %64 : vector<4x256xf32>
    %c8_44 = arith.constant 8 : index
    %c0_45 = arith.constant 0 : index
    %c0_46 = arith.constant 0 : index
    %66 = vector.load %arg5[%c8_44, %c0_45, %c0_46] : memref<9x4x4xf32, #tpu.memory_space<vmem>>, vector<1x4x4xf32>
    %67 = vector.shape_cast %66 : vector<1x4x4xf32> to vector<4x4xf32>
    %cst_47 = arith.constant dense<0.000000e+00> : vector<4x256xf32>
    %68 = tpu.matmul %67, %65, %cst_47 {dimension_numbers = #tpu.dot_dimension_numbers<[1], [0], [0], [1], [0, 0, 1, 1], [], []>} : vector<4x4xf32>, vector<4x256xf32>, vector<4x256xf32> -> vector<4x256xf32>
    %69 = arith.addf %61, %68 : vector<4x256xf32>
    %c0_48 = arith.constant 0 : index
    %c0_49 = arith.constant 0 : index
    %70 = vector.load %arg6[%c0_48, %c0_49] : memref<4x1xf32, #tpu.memory_space<vmem>>, vector<4x1xf32>
    %71 = vector.broadcast %70 : vector<4x1xf32> to vector<4x256xf32>
    %72 = arith.addf %69, %71 : vector<4x256xf32>
    %c4_50 = arith.constant 4 : index
    %c0_51 = arith.constant 0 : index
    %c0_52 = arith.constant 0 : index
    %73 = vector.load %arg7[%c4_50, %c0_51, %c0_52] : memref<9x8x4xf32, #tpu.memory_space<vmem>>, vector<1x8x4xf32>
    %74 = vector.shape_cast %73 : vector<1x8x4xf32> to vector<8x4xf32>
    %cst_53 = arith.constant dense<0.000000e+00> : vector<8x256xf32>
    %75 = tpu.matmul %74, %72, %cst_53 {dimension_numbers = #tpu.dot_dimension_numbers<[1], [0], [0], [1], [0, 0, 1, 1], [], []>} : vector<8x4xf32>, vector<4x256xf32>, vector<8x256xf32> -> vector<8x256xf32>
    %c17_i32_54 = arith.constant 17 : i32
    %76 = tpu.dynamic_rotate %72 by %c17_i32_54 dim 1 : vector<4x256xf32>, i32 -> vector<4x256xf32>
    %c0_55 = arith.constant 0 : index
    %c0_56 = arith.constant 0 : index
    %77 = vector.load %arg2[%c0_55, %c0_56] : memref<9x256xf32, #tpu.memory_space<vmem>>, vector<1x256xf32>
    %78 = vector.broadcast %77 : vector<1x256xf32> to vector<4x256xf32>
    %79 = arith.mulf %76, %78 : vector<4x256xf32>
    %c0_57 = arith.constant 0 : index
    %c0_58 = arith.constant 0 : index
    %c0_59 = arith.constant 0 : index
    %80 = vector.load %arg7[%c0_57, %c0_58, %c0_59] : memref<9x8x4xf32, #tpu.memory_space<vmem>>, vector<1x8x4xf32>
    %81 = vector.shape_cast %80 : vector<1x8x4xf32> to vector<8x4xf32>
    %cst_60 = arith.constant dense<0.000000e+00> : vector<8x256xf32>
    %82 = tpu.matmul %81, %79, %cst_60 {dimension_numbers = #tpu.dot_dimension_numbers<[1], [0], [0], [1], [0, 0, 1, 1], [], []>} : vector<8x4xf32>, vector<4x256xf32>, vector<8x256xf32> -> vector<8x256xf32>
    %83 = arith.addf %75, %82 : vector<8x256xf32>
    %c16_i32_61 = arith.constant 16 : i32
    %84 = tpu.dynamic_rotate %72 by %c16_i32_61 dim 1 : vector<4x256xf32>, i32 -> vector<4x256xf32>
    %c1_62 = arith.constant 1 : index
    %c0_63 = arith.constant 0 : index
    %85 = vector.load %arg2[%c1_62, %c0_63] : memref<9x256xf32, #tpu.memory_space<vmem>>, vector<1x256xf32>
    %86 = vector.broadcast %85 : vector<1x256xf32> to vector<4x256xf32>
    %87 = arith.mulf %84, %86 : vector<4x256xf32>
    %c1_64 = arith.constant 1 : index
    %c0_65 = arith.constant 0 : index
    %c0_66 = arith.constant 0 : index
    %88 = vector.load %arg7[%c1_64, %c0_65, %c0_66] : memref<9x8x4xf32, #tpu.memory_space<vmem>>, vector<1x8x4xf32>
    %89 = vector.shape_cast %88 : vector<1x8x4xf32> to vector<8x4xf32>
    %cst_67 = arith.constant dense<0.000000e+00> : vector<8x256xf32>
    %90 = tpu.matmul %89, %87, %cst_67 {dimension_numbers = #tpu.dot_dimension_numbers<[1], [0], [0], [1], [0, 0, 1, 1], [], []>} : vector<8x4xf32>, vector<4x256xf32>, vector<8x256xf32> -> vector<8x256xf32>
    %91 = arith.addf %83, %90 : vector<8x256xf32>
    %c15_i32_68 = arith.constant 15 : i32
    %92 = tpu.dynamic_rotate %72 by %c15_i32_68 dim 1 : vector<4x256xf32>, i32 -> vector<4x256xf32>
    %c2_69 = arith.constant 2 : index
    %c0_70 = arith.constant 0 : index
    %93 = vector.load %arg2[%c2_69, %c0_70] : memref<9x256xf32, #tpu.memory_space<vmem>>, vector<1x256xf32>
    %94 = vector.broadcast %93 : vector<1x256xf32> to vector<4x256xf32>
    %95 = arith.mulf %92, %94 : vector<4x256xf32>
    %c2_71 = arith.constant 2 : index
    %c0_72 = arith.constant 0 : index
    %c0_73 = arith.constant 0 : index
    %96 = vector.load %arg7[%c2_71, %c0_72, %c0_73] : memref<9x8x4xf32, #tpu.memory_space<vmem>>, vector<1x8x4xf32>
    %97 = vector.shape_cast %96 : vector<1x8x4xf32> to vector<8x4xf32>
    %cst_74 = arith.constant dense<0.000000e+00> : vector<8x256xf32>
    %98 = tpu.matmul %97, %95, %cst_74 {dimension_numbers = #tpu.dot_dimension_numbers<[1], [0], [0], [1], [0, 0, 1, 1], [], []>} : vector<8x4xf32>, vector<4x256xf32>, vector<8x256xf32> -> vector<8x256xf32>
    %99 = arith.addf %91, %98 : vector<8x256xf32>
    %c1_i32_75 = arith.constant 1 : i32
    %100 = tpu.dynamic_rotate %72 by %c1_i32_75 dim 1 : vector<4x256xf32>, i32 -> vector<4x256xf32>
    %c3_76 = arith.constant 3 : index
    %c0_77 = arith.constant 0 : index
    %101 = vector.load %arg2[%c3_76, %c0_77] : memref<9x256xf32, #tpu.memory_space<vmem>>, vector<1x256xf32>
    %102 = vector.broadcast %101 : vector<1x256xf32> to vector<4x256xf32>
    %103 = arith.mulf %100, %102 : vector<4x256xf32>
    %c3_78 = arith.constant 3 : index
    %c0_79 = arith.constant 0 : index
    %c0_80 = arith.constant 0 : index
    %104 = vector.load %arg7[%c3_78, %c0_79, %c0_80] : memref<9x8x4xf32, #tpu.memory_space<vmem>>, vector<1x8x4xf32>
    %105 = vector.shape_cast %104 : vector<1x8x4xf32> to vector<8x4xf32>
    %cst_81 = arith.constant dense<0.000000e+00> : vector<8x256xf32>
    %106 = tpu.matmul %105, %103, %cst_81 {dimension_numbers = #tpu.dot_dimension_numbers<[1], [0], [0], [1], [0, 0, 1, 1], [], []>} : vector<8x4xf32>, vector<4x256xf32>, vector<8x256xf32> -> vector<8x256xf32>
    %107 = arith.addf %99, %106 : vector<8x256xf32>
    %c255_i32_82 = arith.constant 255 : i32
    %108 = tpu.dynamic_rotate %72 by %c255_i32_82 dim 1 : vector<4x256xf32>, i32 -> vector<4x256xf32>
    %c5_83 = arith.constant 5 : index
    %c0_84 = arith.constant 0 : index
    %109 = vector.load %arg2[%c5_83, %c0_84] : memref<9x256xf32, #tpu.memory_space<vmem>>, vector<1x256xf32>
    %110 = vector.broadcast %109 : vector<1x256xf32> to vector<4x256xf32>
    %111 = arith.mulf %108, %110 : vector<4x256xf32>
    %c5_85 = arith.constant 5 : index
    %c0_86 = arith.constant 0 : index
    %c0_87 = arith.constant 0 : index
    %112 = vector.load %arg7[%c5_85, %c0_86, %c0_87] : memref<9x8x4xf32, #tpu.memory_space<vmem>>, vector<1x8x4xf32>
    %113 = vector.shape_cast %112 : vector<1x8x4xf32> to vector<8x4xf32>
    %cst_88 = arith.constant dense<0.000000e+00> : vector<8x256xf32>
    %114 = tpu.matmul %113, %111, %cst_88 {dimension_numbers = #tpu.dot_dimension_numbers<[1], [0], [0], [1], [0, 0, 1, 1], [], []>} : vector<8x4xf32>, vector<4x256xf32>, vector<8x256xf32> -> vector<8x256xf32>
    %115 = arith.addf %107, %114 : vector<8x256xf32>
    %c241_i32_89 = arith.constant 241 : i32
    %116 = tpu.dynamic_rotate %72 by %c241_i32_89 dim 1 : vector<4x256xf32>, i32 -> vector<4x256xf32>
    %c6_90 = arith.constant 6 : index
    %c0_91 = arith.constant 0 : index
    %117 = vector.load %arg2[%c6_90, %c0_91] : memref<9x256xf32, #tpu.memory_space<vmem>>, vector<1x256xf32>
    %118 = vector.broadcast %117 : vector<1x256xf32> to vector<4x256xf32>
    %119 = arith.mulf %116, %118 : vector<4x256xf32>
    %c6_92 = arith.constant 6 : index
    %c0_93 = arith.constant 0 : index
    %c0_94 = arith.constant 0 : index
    %120 = vector.load %arg7[%c6_92, %c0_93, %c0_94] : memref<9x8x4xf32, #tpu.memory_space<vmem>>, vector<1x8x4xf32>
    %121 = vector.shape_cast %120 : vector<1x8x4xf32> to vector<8x4xf32>
    %cst_95 = arith.constant dense<0.000000e+00> : vector<8x256xf32>
    %122 = tpu.matmul %121, %119, %cst_95 {dimension_numbers = #tpu.dot_dimension_numbers<[1], [0], [0], [1], [0, 0, 1, 1], [], []>} : vector<8x4xf32>, vector<4x256xf32>, vector<8x256xf32> -> vector<8x256xf32>
    %123 = arith.addf %115, %122 : vector<8x256xf32>
    %c240_i32_96 = arith.constant 240 : i32
    %124 = tpu.dynamic_rotate %72 by %c240_i32_96 dim 1 : vector<4x256xf32>, i32 -> vector<4x256xf32>
    %c7_97 = arith.constant 7 : index
    %c0_98 = arith.constant 0 : index
    %125 = vector.load %arg2[%c7_97, %c0_98] : memref<9x256xf32, #tpu.memory_space<vmem>>, vector<1x256xf32>
    %126 = vector.broadcast %125 : vector<1x256xf32> to vector<4x256xf32>
    %127 = arith.mulf %124, %126 : vector<4x256xf32>
    %c7_99 = arith.constant 7 : index
    %c0_100 = arith.constant 0 : index
    %c0_101 = arith.constant 0 : index
    %128 = vector.load %arg7[%c7_99, %c0_100, %c0_101] : memref<9x8x4xf32, #tpu.memory_space<vmem>>, vector<1x8x4xf32>
    %129 = vector.shape_cast %128 : vector<1x8x4xf32> to vector<8x4xf32>
    %cst_102 = arith.constant dense<0.000000e+00> : vector<8x256xf32>
    %130 = tpu.matmul %129, %127, %cst_102 {dimension_numbers = #tpu.dot_dimension_numbers<[1], [0], [0], [1], [0, 0, 1, 1], [], []>} : vector<8x4xf32>, vector<4x256xf32>, vector<8x256xf32> -> vector<8x256xf32>
    %131 = arith.addf %123, %130 : vector<8x256xf32>
    %c239_i32_103 = arith.constant 239 : i32
    %132 = tpu.dynamic_rotate %72 by %c239_i32_103 dim 1 : vector<4x256xf32>, i32 -> vector<4x256xf32>
    %c8_104 = arith.constant 8 : index
    %c0_105 = arith.constant 0 : index
    %133 = vector.load %arg2[%c8_104, %c0_105] : memref<9x256xf32, #tpu.memory_space<vmem>>, vector<1x256xf32>
    %134 = vector.broadcast %133 : vector<1x256xf32> to vector<4x256xf32>
    %135 = arith.mulf %132, %134 : vector<4x256xf32>
    %c8_106 = arith.constant 8 : index
    %c0_107 = arith.constant 0 : index
    %c0_108 = arith.constant 0 : index
    %136 = vector.load %arg7[%c8_106, %c0_107, %c0_108] : memref<9x8x4xf32, #tpu.memory_space<vmem>>, vector<1x8x4xf32>
    %137 = vector.shape_cast %136 : vector<1x8x4xf32> to vector<8x4xf32>
    %cst_109 = arith.constant dense<0.000000e+00> : vector<8x256xf32>
    %138 = tpu.matmul %137, %135, %cst_109 {dimension_numbers = #tpu.dot_dimension_numbers<[1], [0], [0], [1], [0, 0, 1, 1], [], []>} : vector<8x4xf32>, vector<4x256xf32>, vector<8x256xf32> -> vector<8x256xf32>
    %139 = arith.addf %131, %138 : vector<8x256xf32>
    %c0_110 = arith.constant 0 : index
    %c0_111 = arith.constant 0 : index
    %140 = vector.load %arg8[%c0_110, %c0_111] : memref<8x1xf32, #tpu.memory_space<vmem>>, vector<8x1xf32>
    %141 = vector.broadcast %140 : vector<8x1xf32> to vector<8x256xf32>
    %142 = arith.addf %139, %141 : vector<8x256xf32>
    %cst_112 = arith.constant 0.000000e+00 : f32
    %143 = vector.broadcast %cst_112 : f32 to vector<8x256xf32>
    %144 = arith.maximumf %142, %143 : vector<8x256xf32>
    %c255_i32_113 = arith.constant 255 : i32
    %145 = tpu.dynamic_rotate %144 by %c255_i32_113 dim 1 : vector<8x256xf32>, i32 -> vector<8x256xf32>
    %c1_i32_114 = arith.constant 1 : i32
    %146 = tpu.dynamic_rotate %144 by %c1_i32_114 dim 1 : vector<8x256xf32>, i32 -> vector<8x256xf32>
    %147 = arith.maximumf %144, %145 : vector<8x256xf32>
    %148 = vector.broadcast %1 : vector<1x256xf32> to vector<8x256xf32>
    %149 = arith.mulf %148, %147 : vector<8x256xf32>
    %cst_115 = arith.constant 1.000000e+00 : f32
    %150 = vector.broadcast %cst_115 : f32 to vector<1x256xf32>
    %151 = arith.subf %150, %1 : vector<1x256xf32>
    %152 = arith.maximumf %144, %146 : vector<8x256xf32>
    %153 = vector.broadcast %151 : vector<1x256xf32> to vector<8x256xf32>
    %154 = arith.mulf %153, %152 : vector<8x256xf32>
    %155 = arith.addf %149, %154 : vector<8x256xf32>
    %c240_i32_116 = arith.constant 240 : i32
    %156 = tpu.dynamic_rotate %155 by %c240_i32_116 dim 1 : vector<8x256xf32>, i32 -> vector<8x256xf32>
    %c16_i32_117 = arith.constant 16 : i32
    %157 = tpu.dynamic_rotate %155 by %c16_i32_117 dim 1 : vector<8x256xf32>, i32 -> vector<8x256xf32>
    %158 = arith.maximumf %155, %156 : vector<8x256xf32>
    %159 = vector.broadcast %2 : vector<1x256xf32> to vector<8x256xf32>
    %160 = arith.mulf %159, %158 : vector<8x256xf32>
    %cst_118 = arith.constant 1.000000e+00 : f32
    %161 = vector.broadcast %cst_118 : f32 to vector<1x256xf32>
    %162 = arith.subf %161, %2 : vector<1x256xf32>
    %163 = arith.maximumf %155, %157 : vector<8x256xf32>
    %164 = vector.broadcast %162 : vector<1x256xf32> to vector<8x256xf32>
    %165 = arith.mulf %164, %163 : vector<8x256xf32>
    %166 = arith.addf %160, %165 : vector<8x256xf32>
    %c4_119 = arith.constant 4 : index
    %c0_120 = arith.constant 0 : index
    %c0_121 = arith.constant 0 : index
    %167 = vector.load %arg9[%c4_119, %c0_120, %c0_121] : memref<9x16x8xf32, #tpu.memory_space<vmem>>, vector<1x16x8xf32>
    %168 = vector.shape_cast %167 : vector<1x16x8xf32> to vector<16x8xf32>
    %cst_122 = arith.constant dense<0.000000e+00> : vector<16x256xf32>
    %169 = tpu.matmul %168, %166, %cst_122 {dimension_numbers = #tpu.dot_dimension_numbers<[1], [0], [0], [1], [0, 0, 1, 1], [], []>} : vector<16x8xf32>, vector<8x256xf32>, vector<16x256xf32> -> vector<16x256xf32>
    %c34_i32 = arith.constant 34 : i32
    %170 = tpu.dynamic_rotate %166 by %c34_i32 dim 1 : vector<8x256xf32>, i32 -> vector<8x256xf32>
    %c0_123 = arith.constant 0 : index
    %c0_124 = arith.constant 0 : index
    %171 = vector.load %arg3[%c0_123, %c0_124] : memref<9x256xf32, #tpu.memory_space<vmem>>, vector<1x256xf32>
    %172 = vector.broadcast %171 : vector<1x256xf32> to vector<8x256xf32>
    %173 = arith.mulf %170, %172 : vector<8x256xf32>
    %c0_125 = arith.constant 0 : index
    %c0_126 = arith.constant 0 : index
    %c0_127 = arith.constant 0 : index
    %174 = vector.load %arg9[%c0_125, %c0_126, %c0_127] : memref<9x16x8xf32, #tpu.memory_space<vmem>>, vector<1x16x8xf32>
    %175 = vector.shape_cast %174 : vector<1x16x8xf32> to vector<16x8xf32>
    %cst_128 = arith.constant dense<0.000000e+00> : vector<16x256xf32>
    %176 = tpu.matmul %175, %173, %cst_128 {dimension_numbers = #tpu.dot_dimension_numbers<[1], [0], [0], [1], [0, 0, 1, 1], [], []>} : vector<16x8xf32>, vector<8x256xf32>, vector<16x256xf32> -> vector<16x256xf32>
    %177 = arith.addf %169, %176 : vector<16x256xf32>
    %c32_i32 = arith.constant 32 : i32
    %178 = tpu.dynamic_rotate %166 by %c32_i32 dim 1 : vector<8x256xf32>, i32 -> vector<8x256xf32>
    %c1_129 = arith.constant 1 : index
    %c0_130 = arith.constant 0 : index
    %179 = vector.load %arg3[%c1_129, %c0_130] : memref<9x256xf32, #tpu.memory_space<vmem>>, vector<1x256xf32>
    %180 = vector.broadcast %179 : vector<1x256xf32> to vector<8x256xf32>
    %181 = arith.mulf %178, %180 : vector<8x256xf32>
    %c1_131 = arith.constant 1 : index
    %c0_132 = arith.constant 0 : index
    %c0_133 = arith.constant 0 : index
    %182 = vector.load %arg9[%c1_131, %c0_132, %c0_133] : memref<9x16x8xf32, #tpu.memory_space<vmem>>, vector<1x16x8xf32>
    %183 = vector.shape_cast %182 : vector<1x16x8xf32> to vector<16x8xf32>
    %cst_134 = arith.constant dense<0.000000e+00> : vector<16x256xf32>
    %184 = tpu.matmul %183, %181, %cst_134 {dimension_numbers = #tpu.dot_dimension_numbers<[1], [0], [0], [1], [0, 0, 1, 1], [], []>} : vector<16x8xf32>, vector<8x256xf32>, vector<16x256xf32> -> vector<16x256xf32>
    %185 = arith.addf %177, %184 : vector<16x256xf32>
    %c30_i32 = arith.constant 30 : i32
    %186 = tpu.dynamic_rotate %166 by %c30_i32 dim 1 : vector<8x256xf32>, i32 -> vector<8x256xf32>
    %c2_135 = arith.constant 2 : index
    %c0_136 = arith.constant 0 : index
    %187 = vector.load %arg3[%c2_135, %c0_136] : memref<9x256xf32, #tpu.memory_space<vmem>>, vector<1x256xf32>
    %188 = vector.broadcast %187 : vector<1x256xf32> to vector<8x256xf32>
    %189 = arith.mulf %186, %188 : vector<8x256xf32>
    %c2_137 = arith.constant 2 : index
    %c0_138 = arith.constant 0 : index
    %c0_139 = arith.constant 0 : index
    %190 = vector.load %arg9[%c2_137, %c0_138, %c0_139] : memref<9x16x8xf32, #tpu.memory_space<vmem>>, vector<1x16x8xf32>
    %191 = vector.shape_cast %190 : vector<1x16x8xf32> to vector<16x8xf32>
    %cst_140 = arith.constant dense<0.000000e+00> : vector<16x256xf32>
    %192 = tpu.matmul %191, %189, %cst_140 {dimension_numbers = #tpu.dot_dimension_numbers<[1], [0], [0], [1], [0, 0, 1, 1], [], []>} : vector<16x8xf32>, vector<8x256xf32>, vector<16x256xf32> -> vector<16x256xf32>
    %193 = arith.addf %185, %192 : vector<16x256xf32>
    %c2_i32 = arith.constant 2 : i32
    %194 = tpu.dynamic_rotate %166 by %c2_i32 dim 1 : vector<8x256xf32>, i32 -> vector<8x256xf32>
    %c3_141 = arith.constant 3 : index
    %c0_142 = arith.constant 0 : index
    %195 = vector.load %arg3[%c3_141, %c0_142] : memref<9x256xf32, #tpu.memory_space<vmem>>, vector<1x256xf32>
    %196 = vector.broadcast %195 : vector<1x256xf32> to vector<8x256xf32>
    %197 = arith.mulf %194, %196 : vector<8x256xf32>
    %c3_143 = arith.constant 3 : index
    %c0_144 = arith.constant 0 : index
    %c0_145 = arith.constant 0 : index
    %198 = vector.load %arg9[%c3_143, %c0_144, %c0_145] : memref<9x16x8xf32, #tpu.memory_space<vmem>>, vector<1x16x8xf32>
    %199 = vector.shape_cast %198 : vector<1x16x8xf32> to vector<16x8xf32>
    %cst_146 = arith.constant dense<0.000000e+00> : vector<16x256xf32>
    %200 = tpu.matmul %199, %197, %cst_146 {dimension_numbers = #tpu.dot_dimension_numbers<[1], [0], [0], [1], [0, 0, 1, 1], [], []>} : vector<16x8xf32>, vector<8x256xf32>, vector<16x256xf32> -> vector<16x256xf32>
    %201 = arith.addf %193, %200 : vector<16x256xf32>
    %c254_i32 = arith.constant 254 : i32
    %202 = tpu.dynamic_rotate %166 by %c254_i32 dim 1 : vector<8x256xf32>, i32 -> vector<8x256xf32>
    %c5_147 = arith.constant 5 : index
    %c0_148 = arith.constant 0 : index
    %203 = vector.load %arg3[%c5_147, %c0_148] : memref<9x256xf32, #tpu.memory_space<vmem>>, vector<1x256xf32>
    %204 = vector.broadcast %203 : vector<1x256xf32> to vector<8x256xf32>
    %205 = arith.mulf %202, %204 : vector<8x256xf32>
    %c5_149 = arith.constant 5 : index
    %c0_150 = arith.constant 0 : index
    %c0_151 = arith.constant 0 : index
    %206 = vector.load %arg9[%c5_149, %c0_150, %c0_151] : memref<9x16x8xf32, #tpu.memory_space<vmem>>, vector<1x16x8xf32>
    %207 = vector.shape_cast %206 : vector<1x16x8xf32> to vector<16x8xf32>
    %cst_152 = arith.constant dense<0.000000e+00> : vector<16x256xf32>
    %208 = tpu.matmul %207, %205, %cst_152 {dimension_numbers = #tpu.dot_dimension_numbers<[1], [0], [0], [1], [0, 0, 1, 1], [], []>} : vector<16x8xf32>, vector<8x256xf32>, vector<16x256xf32> -> vector<16x256xf32>
    %209 = arith.addf %201, %208 : vector<16x256xf32>
    %c226_i32 = arith.constant 226 : i32
    %210 = tpu.dynamic_rotate %166 by %c226_i32 dim 1 : vector<8x256xf32>, i32 -> vector<8x256xf32>
    %c6_153 = arith.constant 6 : index
    %c0_154 = arith.constant 0 : index
    %211 = vector.load %arg3[%c6_153, %c0_154] : memref<9x256xf32, #tpu.memory_space<vmem>>, vector<1x256xf32>
    %212 = vector.broadcast %211 : vector<1x256xf32> to vector<8x256xf32>
    %213 = arith.mulf %210, %212 : vector<8x256xf32>
    %c6_155 = arith.constant 6 : index
    %c0_156 = arith.constant 0 : index
    %c0_157 = arith.constant 0 : index
    %214 = vector.load %arg9[%c6_155, %c0_156, %c0_157] : memref<9x16x8xf32, #tpu.memory_space<vmem>>, vector<1x16x8xf32>
    %215 = vector.shape_cast %214 : vector<1x16x8xf32> to vector<16x8xf32>
    %cst_158 = arith.constant dense<0.000000e+00> : vector<16x256xf32>
    %216 = tpu.matmul %215, %213, %cst_158 {dimension_numbers = #tpu.dot_dimension_numbers<[1], [0], [0], [1], [0, 0, 1, 1], [], []>} : vector<16x8xf32>, vector<8x256xf32>, vector<16x256xf32> -> vector<16x256xf32>
    %217 = arith.addf %209, %216 : vector<16x256xf32>
    %c224_i32 = arith.constant 224 : i32
    %218 = tpu.dynamic_rotate %166 by %c224_i32 dim 1 : vector<8x256xf32>, i32 -> vector<8x256xf32>
    %c7_159 = arith.constant 7 : index
    %c0_160 = arith.constant 0 : index
    %219 = vector.load %arg3[%c7_159, %c0_160] : memref<9x256xf32, #tpu.memory_space<vmem>>, vector<1x256xf32>
    %220 = vector.broadcast %219 : vector<1x256xf32> to vector<8x256xf32>
    %221 = arith.mulf %218, %220 : vector<8x256xf32>
    %c7_161 = arith.constant 7 : index
    %c0_162 = arith.constant 0 : index
    %c0_163 = arith.constant 0 : index
    %222 = vector.load %arg9[%c7_161, %c0_162, %c0_163] : memref<9x16x8xf32, #tpu.memory_space<vmem>>, vector<1x16x8xf32>
    %223 = vector.shape_cast %222 : vector<1x16x8xf32> to vector<16x8xf32>
    %cst_164 = arith.constant dense<0.000000e+00> : vector<16x256xf32>
    %224 = tpu.matmul %223, %221, %cst_164 {dimension_numbers = #tpu.dot_dimension_numbers<[1], [0], [0], [1], [0, 0, 1, 1], [], []>} : vector<16x8xf32>, vector<8x256xf32>, vector<16x256xf32> -> vector<16x256xf32>
    %225 = arith.addf %217, %224 : vector<16x256xf32>
    %c222_i32 = arith.constant 222 : i32
    %226 = tpu.dynamic_rotate %166 by %c222_i32 dim 1 : vector<8x256xf32>, i32 -> vector<8x256xf32>
    %c8_165 = arith.constant 8 : index
    %c0_166 = arith.constant 0 : index
    %227 = vector.load %arg3[%c8_165, %c0_166] : memref<9x256xf32, #tpu.memory_space<vmem>>, vector<1x256xf32>
    %228 = vector.broadcast %227 : vector<1x256xf32> to vector<8x256xf32>
    %229 = arith.mulf %226, %228 : vector<8x256xf32>
    %c8_167 = arith.constant 8 : index
    %c0_168 = arith.constant 0 : index
    %c0_169 = arith.constant 0 : index
    %230 = vector.load %arg9[%c8_167, %c0_168, %c0_169] : memref<9x16x8xf32, #tpu.memory_space<vmem>>, vector<1x16x8xf32>
    %231 = vector.shape_cast %230 : vector<1x16x8xf32> to vector<16x8xf32>
    %cst_170 = arith.constant dense<0.000000e+00> : vector<16x256xf32>
    %232 = tpu.matmul %231, %229, %cst_170 {dimension_numbers = #tpu.dot_dimension_numbers<[1], [0], [0], [1], [0, 0, 1, 1], [], []>} : vector<16x8xf32>, vector<8x256xf32>, vector<16x256xf32> -> vector<16x256xf32>
    %233 = arith.addf %225, %232 : vector<16x256xf32>
    %c0_171 = arith.constant 0 : index
    %c0_172 = arith.constant 0 : index
    %234 = vector.load %arg10[%c0_171, %c0_172] : memref<16x1xf32, #tpu.memory_space<vmem>>, vector<16x1xf32>
    %235 = vector.broadcast %234 : vector<16x1xf32> to vector<16x256xf32>
    %236 = arith.addf %233, %235 : vector<16x256xf32>
    %cst_173 = arith.constant 0.000000e+00 : f32
    %237 = vector.broadcast %cst_173 : f32 to vector<16x256xf32>
    %238 = arith.maximumf %236, %237 : vector<16x256xf32>
    %c4_174 = arith.constant 4 : index
    %c0_175 = arith.constant 0 : index
    %c0_176 = arith.constant 0 : index
    %239 = vector.load %arg11[%c4_174, %c0_175, %c0_176] : memref<9x8x16xf32, #tpu.memory_space<vmem>>, vector<1x8x16xf32>
    %240 = vector.shape_cast %239 : vector<1x8x16xf32> to vector<8x16xf32>
    %cst_177 = arith.constant dense<0.000000e+00> : vector<8x256xf32>
    %241 = tpu.matmul %240, %238, %cst_177 {dimension_numbers = #tpu.dot_dimension_numbers<[1], [0], [0], [1], [0, 0, 1, 1], [], []>} : vector<8x16xf32>, vector<16x256xf32>, vector<8x256xf32> -> vector<8x256xf32>
    %c17_i32_178 = arith.constant 17 : i32
    %242 = tpu.dynamic_rotate %238 by %c17_i32_178 dim 1 : vector<16x256xf32>, i32 -> vector<16x256xf32>
    %c0_179 = arith.constant 0 : index
    %c0_180 = arith.constant 0 : index
    %243 = vector.load %arg2[%c0_179, %c0_180] : memref<9x256xf32, #tpu.memory_space<vmem>>, vector<1x256xf32>
    %244 = vector.broadcast %243 : vector<1x256xf32> to vector<16x256xf32>
    %245 = arith.mulf %242, %244 : vector<16x256xf32>
    %c0_181 = arith.constant 0 : index
    %c0_182 = arith.constant 0 : index
    %c0_183 = arith.constant 0 : index
    %246 = vector.load %arg11[%c0_181, %c0_182, %c0_183] : memref<9x8x16xf32, #tpu.memory_space<vmem>>, vector<1x8x16xf32>
    %247 = vector.shape_cast %246 : vector<1x8x16xf32> to vector<8x16xf32>
    %cst_184 = arith.constant dense<0.000000e+00> : vector<8x256xf32>
    %248 = tpu.matmul %247, %245, %cst_184 {dimension_numbers = #tpu.dot_dimension_numbers<[1], [0], [0], [1], [0, 0, 1, 1], [], []>} : vector<8x16xf32>, vector<16x256xf32>, vector<8x256xf32> -> vector<8x256xf32>
    %249 = arith.addf %241, %248 : vector<8x256xf32>
    %c16_i32_185 = arith.constant 16 : i32
    %250 = tpu.dynamic_rotate %238 by %c16_i32_185 dim 1 : vector<16x256xf32>, i32 -> vector<16x256xf32>
    %c1_186 = arith.constant 1 : index
    %c0_187 = arith.constant 0 : index
    %251 = vector.load %arg2[%c1_186, %c0_187] : memref<9x256xf32, #tpu.memory_space<vmem>>, vector<1x256xf32>
    %252 = vector.broadcast %251 : vector<1x256xf32> to vector<16x256xf32>
    %253 = arith.mulf %250, %252 : vector<16x256xf32>
    %c1_188 = arith.constant 1 : index
    %c0_189 = arith.constant 0 : index
    %c0_190 = arith.constant 0 : index
    %254 = vector.load %arg11[%c1_188, %c0_189, %c0_190] : memref<9x8x16xf32, #tpu.memory_space<vmem>>, vector<1x8x16xf32>
    %255 = vector.shape_cast %254 : vector<1x8x16xf32> to vector<8x16xf32>
    %cst_191 = arith.constant dense<0.000000e+00> : vector<8x256xf32>
    %256 = tpu.matmul %255, %253, %cst_191 {dimension_numbers = #tpu.dot_dimension_numbers<[1], [0], [0], [1], [0, 0, 1, 1], [], []>} : vector<8x16xf32>, vector<16x256xf32>, vector<8x256xf32> -> vector<8x256xf32>
    %257 = arith.addf %249, %256 : vector<8x256xf32>
    %c15_i32_192 = arith.constant 15 : i32
    %258 = tpu.dynamic_rotate %238 by %c15_i32_192 dim 1 : vector<16x256xf32>, i32 -> vector<16x256xf32>
    %c2_193 = arith.constant 2 : index
    %c0_194 = arith.constant 0 : index
    %259 = vector.load %arg2[%c2_193, %c0_194] : memref<9x256xf32, #tpu.memory_space<vmem>>, vector<1x256xf32>
    %260 = vector.broadcast %259 : vector<1x256xf32> to vector<16x256xf32>
    %261 = arith.mulf %258, %260 : vector<16x256xf32>
    %c2_195 = arith.constant 2 : index
    %c0_196 = arith.constant 0 : index
    %c0_197 = arith.constant 0 : index
    %262 = vector.load %arg11[%c2_195, %c0_196, %c0_197] : memref<9x8x16xf32, #tpu.memory_space<vmem>>, vector<1x8x16xf32>
    %263 = vector.shape_cast %262 : vector<1x8x16xf32> to vector<8x16xf32>
    %cst_198 = arith.constant dense<0.000000e+00> : vector<8x256xf32>
    %264 = tpu.matmul %263, %261, %cst_198 {dimension_numbers = #tpu.dot_dimension_numbers<[1], [0], [0], [1], [0, 0, 1, 1], [], []>} : vector<8x16xf32>, vector<16x256xf32>, vector<8x256xf32> -> vector<8x256xf32>
    %265 = arith.addf %257, %264 : vector<8x256xf32>
    %c1_i32_199 = arith.constant 1 : i32
    %266 = tpu.dynamic_rotate %238 by %c1_i32_199 dim 1 : vector<16x256xf32>, i32 -> vector<16x256xf32>
    %c3_200 = arith.constant 3 : index
    %c0_201 = arith.constant 0 : index
    %267 = vector.load %arg2[%c3_200, %c0_201] : memref<9x256xf32, #tpu.memory_space<vmem>>, vector<1x256xf32>
    %268 = vector.broadcast %267 : vector<1x256xf32> to vector<16x256xf32>
    %269 = arith.mulf %266, %268 : vector<16x256xf32>
    %c3_202 = arith.constant 3 : index
    %c0_203 = arith.constant 0 : index
    %c0_204 = arith.constant 0 : index
    %270 = vector.load %arg11[%c3_202, %c0_203, %c0_204] : memref<9x8x16xf32, #tpu.memory_space<vmem>>, vector<1x8x16xf32>
    %271 = vector.shape_cast %270 : vector<1x8x16xf32> to vector<8x16xf32>
    %cst_205 = arith.constant dense<0.000000e+00> : vector<8x256xf32>
    %272 = tpu.matmul %271, %269, %cst_205 {dimension_numbers = #tpu.dot_dimension_numbers<[1], [0], [0], [1], [0, 0, 1, 1], [], []>} : vector<8x16xf32>, vector<16x256xf32>, vector<8x256xf32> -> vector<8x256xf32>
    %273 = arith.addf %265, %272 : vector<8x256xf32>
    %c255_i32_206 = arith.constant 255 : i32
    %274 = tpu.dynamic_rotate %238 by %c255_i32_206 dim 1 : vector<16x256xf32>, i32 -> vector<16x256xf32>
    %c5_207 = arith.constant 5 : index
    %c0_208 = arith.constant 0 : index
    %275 = vector.load %arg2[%c5_207, %c0_208] : memref<9x256xf32, #tpu.memory_space<vmem>>, vector<1x256xf32>
    %276 = vector.broadcast %275 : vector<1x256xf32> to vector<16x256xf32>
    %277 = arith.mulf %274, %276 : vector<16x256xf32>
    %c5_209 = arith.constant 5 : index
    %c0_210 = arith.constant 0 : index
    %c0_211 = arith.constant 0 : index
    %278 = vector.load %arg11[%c5_209, %c0_210, %c0_211] : memref<9x8x16xf32, #tpu.memory_space<vmem>>, vector<1x8x16xf32>
    %279 = vector.shape_cast %278 : vector<1x8x16xf32> to vector<8x16xf32>
    %cst_212 = arith.constant dense<0.000000e+00> : vector<8x256xf32>
    %280 = tpu.matmul %279, %277, %cst_212 {dimension_numbers = #tpu.dot_dimension_numbers<[1], [0], [0], [1], [0, 0, 1, 1], [], []>} : vector<8x16xf32>, vector<16x256xf32>, vector<8x256xf32> -> vector<8x256xf32>
    %281 = arith.addf %273, %280 : vector<8x256xf32>
    %c241_i32_213 = arith.constant 241 : i32
    %282 = tpu.dynamic_rotate %238 by %c241_i32_213 dim 1 : vector<16x256xf32>, i32 -> vector<16x256xf32>
    %c6_214 = arith.constant 6 : index
    %c0_215 = arith.constant 0 : index
    %283 = vector.load %arg2[%c6_214, %c0_215] : memref<9x256xf32, #tpu.memory_space<vmem>>, vector<1x256xf32>
    %284 = vector.broadcast %283 : vector<1x256xf32> to vector<16x256xf32>
    %285 = arith.mulf %282, %284 : vector<16x256xf32>
    %c6_216 = arith.constant 6 : index
    %c0_217 = arith.constant 0 : index
    %c0_218 = arith.constant 0 : index
    %286 = vector.load %arg11[%c6_216, %c0_217, %c0_218] : memref<9x8x16xf32, #tpu.memory_space<vmem>>, vector<1x8x16xf32>
    %287 = vector.shape_cast %286 : vector<1x8x16xf32> to vector<8x16xf32>
    %cst_219 = arith.constant dense<0.000000e+00> : vector<8x256xf32>
    %288 = tpu.matmul %287, %285, %cst_219 {dimension_numbers = #tpu.dot_dimension_numbers<[1], [0], [0], [1], [0, 0, 1, 1], [], []>} : vector<8x16xf32>, vector<16x256xf32>, vector<8x256xf32> -> vector<8x256xf32>
    %289 = arith.addf %281, %288 : vector<8x256xf32>
    %c240_i32_220 = arith.constant 240 : i32
    %290 = tpu.dynamic_rotate %238 by %c240_i32_220 dim 1 : vector<16x256xf32>, i32 -> vector<16x256xf32>
    %c7_221 = arith.constant 7 : index
    %c0_222 = arith.constant 0 : index
    %291 = vector.load %arg2[%c7_221, %c0_222] : memref<9x256xf32, #tpu.memory_space<vmem>>, vector<1x256xf32>
    %292 = vector.broadcast %291 : vector<1x256xf32> to vector<16x256xf32>
    %293 = arith.mulf %290, %292 : vector<16x256xf32>
    %c7_223 = arith.constant 7 : index
    %c0_224 = arith.constant 0 : index
    %c0_225 = arith.constant 0 : index
    %294 = vector.load %arg11[%c7_223, %c0_224, %c0_225] : memref<9x8x16xf32, #tpu.memory_space<vmem>>, vector<1x8x16xf32>
    %295 = vector.shape_cast %294 : vector<1x8x16xf32> to vector<8x16xf32>
    %cst_226 = arith.constant dense<0.000000e+00> : vector<8x256xf32>
    %296 = tpu.matmul %295, %293, %cst_226 {dimension_numbers = #tpu.dot_dimension_numbers<[1], [0], [0], [1], [0, 0, 1, 1], [], []>} : vector<8x16xf32>, vector<16x256xf32>, vector<8x256xf32> -> vector<8x256xf32>
    %297 = arith.addf %289, %296 : vector<8x256xf32>
    %c239_i32_227 = arith.constant 239 : i32
    %298 = tpu.dynamic_rotate %238 by %c239_i32_227 dim 1 : vector<16x256xf32>, i32 -> vector<16x256xf32>
    %c8_228 = arith.constant 8 : index
    %c0_229 = arith.constant 0 : index
    %299 = vector.load %arg2[%c8_228, %c0_229] : memref<9x256xf32, #tpu.memory_space<vmem>>, vector<1x256xf32>
    %300 = vector.broadcast %299 : vector<1x256xf32> to vector<16x256xf32>
    %301 = arith.mulf %298, %300 : vector<16x256xf32>
    %c8_230 = arith.constant 8 : index
    %c0_231 = arith.constant 0 : index
    %c0_232 = arith.constant 0 : index
    %302 = vector.load %arg11[%c8_230, %c0_231, %c0_232] : memref<9x8x16xf32, #tpu.memory_space<vmem>>, vector<1x8x16xf32>
    %303 = vector.shape_cast %302 : vector<1x8x16xf32> to vector<8x16xf32>
    %cst_233 = arith.constant dense<0.000000e+00> : vector<8x256xf32>
    %304 = tpu.matmul %303, %301, %cst_233 {dimension_numbers = #tpu.dot_dimension_numbers<[1], [0], [0], [1], [0, 0, 1, 1], [], []>} : vector<8x16xf32>, vector<16x256xf32>, vector<8x256xf32> -> vector<8x256xf32>
    %305 = arith.addf %297, %304 : vector<8x256xf32>
    %c4_234 = arith.constant 4 : index
    %c0_235 = arith.constant 0 : index
    %c0_236 = arith.constant 0 : index
    %306 = vector.load %arg12[%c4_234, %c0_235, %c0_236] : memref<9x8x8xf32, #tpu.memory_space<vmem>>, vector<1x8x8xf32>
    %307 = vector.shape_cast %306 : vector<1x8x8xf32> to vector<8x8xf32>
    %cst_237 = arith.constant dense<0.000000e+00> : vector<8x256xf32>
    %308 = tpu.matmul %307, %144, %cst_237 {dimension_numbers = #tpu.dot_dimension_numbers<[1], [0], [0], [1], [0, 0, 1, 1], [], []>} : vector<8x8xf32>, vector<8x256xf32>, vector<8x256xf32> -> vector<8x256xf32>
    %309 = arith.addf %305, %308 : vector<8x256xf32>
    %c17_i32_238 = arith.constant 17 : i32
    %310 = tpu.dynamic_rotate %144 by %c17_i32_238 dim 1 : vector<8x256xf32>, i32 -> vector<8x256xf32>
    %c0_239 = arith.constant 0 : index
    %c0_240 = arith.constant 0 : index
    %311 = vector.load %arg2[%c0_239, %c0_240] : memref<9x256xf32, #tpu.memory_space<vmem>>, vector<1x256xf32>
    %312 = vector.broadcast %311 : vector<1x256xf32> to vector<8x256xf32>
    %313 = arith.mulf %310, %312 : vector<8x256xf32>
    %c0_241 = arith.constant 0 : index
    %c0_242 = arith.constant 0 : index
    %c0_243 = arith.constant 0 : index
    %314 = vector.load %arg12[%c0_241, %c0_242, %c0_243] : memref<9x8x8xf32, #tpu.memory_space<vmem>>, vector<1x8x8xf32>
    %315 = vector.shape_cast %314 : vector<1x8x8xf32> to vector<8x8xf32>
    %cst_244 = arith.constant dense<0.000000e+00> : vector<8x256xf32>
    %316 = tpu.matmul %315, %313, %cst_244 {dimension_numbers = #tpu.dot_dimension_numbers<[1], [0], [0], [1], [0, 0, 1, 1], [], []>} : vector<8x8xf32>, vector<8x256xf32>, vector<8x256xf32> -> vector<8x256xf32>
    %317 = arith.addf %309, %316 : vector<8x256xf32>
    %c16_i32_245 = arith.constant 16 : i32
    %318 = tpu.dynamic_rotate %144 by %c16_i32_245 dim 1 : vector<8x256xf32>, i32 -> vector<8x256xf32>
    %c1_246 = arith.constant 1 : index
    %c0_247 = arith.constant 0 : index
    %319 = vector.load %arg2[%c1_246, %c0_247] : memref<9x256xf32, #tpu.memory_space<vmem>>, vector<1x256xf32>
    %320 = vector.broadcast %319 : vector<1x256xf32> to vector<8x256xf32>
    %321 = arith.mulf %318, %320 : vector<8x256xf32>
    %c1_248 = arith.constant 1 : index
    %c0_249 = arith.constant 0 : index
    %c0_250 = arith.constant 0 : index
    %322 = vector.load %arg12[%c1_248, %c0_249, %c0_250] : memref<9x8x8xf32, #tpu.memory_space<vmem>>, vector<1x8x8xf32>
    %323 = vector.shape_cast %322 : vector<1x8x8xf32> to vector<8x8xf32>
    %cst_251 = arith.constant dense<0.000000e+00> : vector<8x256xf32>
    %324 = tpu.matmul %323, %321, %cst_251 {dimension_numbers = #tpu.dot_dimension_numbers<[1], [0], [0], [1], [0, 0, 1, 1], [], []>} : vector<8x8xf32>, vector<8x256xf32>, vector<8x256xf32> -> vector<8x256xf32>
    %325 = arith.addf %317, %324 : vector<8x256xf32>
    %c15_i32_252 = arith.constant 15 : i32
    %326 = tpu.dynamic_rotate %144 by %c15_i32_252 dim 1 : vector<8x256xf32>, i32 -> vector<8x256xf32>
    %c2_253 = arith.constant 2 : index
    %c0_254 = arith.constant 0 : index
    %327 = vector.load %arg2[%c2_253, %c0_254] : memref<9x256xf32, #tpu.memory_space<vmem>>, vector<1x256xf32>
    %328 = vector.broadcast %327 : vector<1x256xf32> to vector<8x256xf32>
    %329 = arith.mulf %326, %328 : vector<8x256xf32>
    %c2_255 = arith.constant 2 : index
    %c0_256 = arith.constant 0 : index
    %c0_257 = arith.constant 0 : index
    %330 = vector.load %arg12[%c2_255, %c0_256, %c0_257] : memref<9x8x8xf32, #tpu.memory_space<vmem>>, vector<1x8x8xf32>
    %331 = vector.shape_cast %330 : vector<1x8x8xf32> to vector<8x8xf32>
    %cst_258 = arith.constant dense<0.000000e+00> : vector<8x256xf32>
    %332 = tpu.matmul %331, %329, %cst_258 {dimension_numbers = #tpu.dot_dimension_numbers<[1], [0], [0], [1], [0, 0, 1, 1], [], []>} : vector<8x8xf32>, vector<8x256xf32>, vector<8x256xf32> -> vector<8x256xf32>
    %333 = arith.addf %325, %332 : vector<8x256xf32>
    %c1_i32_259 = arith.constant 1 : i32
    %334 = tpu.dynamic_rotate %144 by %c1_i32_259 dim 1 : vector<8x256xf32>, i32 -> vector<8x256xf32>
    %c3_260 = arith.constant 3 : index
    %c0_261 = arith.constant 0 : index
    %335 = vector.load %arg2[%c3_260, %c0_261] : memref<9x256xf32, #tpu.memory_space<vmem>>, vector<1x256xf32>
    %336 = vector.broadcast %335 : vector<1x256xf32> to vector<8x256xf32>
    %337 = arith.mulf %334, %336 : vector<8x256xf32>
    %c3_262 = arith.constant 3 : index
    %c0_263 = arith.constant 0 : index
    %c0_264 = arith.constant 0 : index
    %338 = vector.load %arg12[%c3_262, %c0_263, %c0_264] : memref<9x8x8xf32, #tpu.memory_space<vmem>>, vector<1x8x8xf32>
    %339 = vector.shape_cast %338 : vector<1x8x8xf32> to vector<8x8xf32>
    %cst_265 = arith.constant dense<0.000000e+00> : vector<8x256xf32>
    %340 = tpu.matmul %339, %337, %cst_265 {dimension_numbers = #tpu.dot_dimension_numbers<[1], [0], [0], [1], [0, 0, 1, 1], [], []>} : vector<8x8xf32>, vector<8x256xf32>, vector<8x256xf32> -> vector<8x256xf32>
    %341 = arith.addf %333, %340 : vector<8x256xf32>
    %c255_i32_266 = arith.constant 255 : i32
    %342 = tpu.dynamic_rotate %144 by %c255_i32_266 dim 1 : vector<8x256xf32>, i32 -> vector<8x256xf32>
    %c5_267 = arith.constant 5 : index
    %c0_268 = arith.constant 0 : index
    %343 = vector.load %arg2[%c5_267, %c0_268] : memref<9x256xf32, #tpu.memory_space<vmem>>, vector<1x256xf32>
    %344 = vector.broadcast %343 : vector<1x256xf32> to vector<8x256xf32>
    %345 = arith.mulf %342, %344 : vector<8x256xf32>
    %c5_269 = arith.constant 5 : index
    %c0_270 = arith.constant 0 : index
    %c0_271 = arith.constant 0 : index
    %346 = vector.load %arg12[%c5_269, %c0_270, %c0_271] : memref<9x8x8xf32, #tpu.memory_space<vmem>>, vector<1x8x8xf32>
    %347 = vector.shape_cast %346 : vector<1x8x8xf32> to vector<8x8xf32>
    %cst_272 = arith.constant dense<0.000000e+00> : vector<8x256xf32>
    %348 = tpu.matmul %347, %345, %cst_272 {dimension_numbers = #tpu.dot_dimension_numbers<[1], [0], [0], [1], [0, 0, 1, 1], [], []>} : vector<8x8xf32>, vector<8x256xf32>, vector<8x256xf32> -> vector<8x256xf32>
    %349 = arith.addf %341, %348 : vector<8x256xf32>
    %c241_i32_273 = arith.constant 241 : i32
    %350 = tpu.dynamic_rotate %144 by %c241_i32_273 dim 1 : vector<8x256xf32>, i32 -> vector<8x256xf32>
    %c6_274 = arith.constant 6 : index
    %c0_275 = arith.constant 0 : index
    %351 = vector.load %arg2[%c6_274, %c0_275] : memref<9x256xf32, #tpu.memory_space<vmem>>, vector<1x256xf32>
    %352 = vector.broadcast %351 : vector<1x256xf32> to vector<8x256xf32>
    %353 = arith.mulf %350, %352 : vector<8x256xf32>
    %c6_276 = arith.constant 6 : index
    %c0_277 = arith.constant 0 : index
    %c0_278 = arith.constant 0 : index
    %354 = vector.load %arg12[%c6_276, %c0_277, %c0_278] : memref<9x8x8xf32, #tpu.memory_space<vmem>>, vector<1x8x8xf32>
    %355 = vector.shape_cast %354 : vector<1x8x8xf32> to vector<8x8xf32>
    %cst_279 = arith.constant dense<0.000000e+00> : vector<8x256xf32>
    %356 = tpu.matmul %355, %353, %cst_279 {dimension_numbers = #tpu.dot_dimension_numbers<[1], [0], [0], [1], [0, 0, 1, 1], [], []>} : vector<8x8xf32>, vector<8x256xf32>, vector<8x256xf32> -> vector<8x256xf32>
    %357 = arith.addf %349, %356 : vector<8x256xf32>
    %c240_i32_280 = arith.constant 240 : i32
    %358 = tpu.dynamic_rotate %144 by %c240_i32_280 dim 1 : vector<8x256xf32>, i32 -> vector<8x256xf32>
    %c7_281 = arith.constant 7 : index
    %c0_282 = arith.constant 0 : index
    %359 = vector.load %arg2[%c7_281, %c0_282] : memref<9x256xf32, #tpu.memory_space<vmem>>, vector<1x256xf32>
    %360 = vector.broadcast %359 : vector<1x256xf32> to vector<8x256xf32>
    %361 = arith.mulf %358, %360 : vector<8x256xf32>
    %c7_283 = arith.constant 7 : index
    %c0_284 = arith.constant 0 : index
    %c0_285 = arith.constant 0 : index
    %362 = vector.load %arg12[%c7_283, %c0_284, %c0_285] : memref<9x8x8xf32, #tpu.memory_space<vmem>>, vector<1x8x8xf32>
    %363 = vector.shape_cast %362 : vector<1x8x8xf32> to vector<8x8xf32>
    %cst_286 = arith.constant dense<0.000000e+00> : vector<8x256xf32>
    %364 = tpu.matmul %363, %361, %cst_286 {dimension_numbers = #tpu.dot_dimension_numbers<[1], [0], [0], [1], [0, 0, 1, 1], [], []>} : vector<8x8xf32>, vector<8x256xf32>, vector<8x256xf32> -> vector<8x256xf32>
    %365 = arith.addf %357, %364 : vector<8x256xf32>
    %c239_i32_287 = arith.constant 239 : i32
    %366 = tpu.dynamic_rotate %144 by %c239_i32_287 dim 1 : vector<8x256xf32>, i32 -> vector<8x256xf32>
    %c8_288 = arith.constant 8 : index
    %c0_289 = arith.constant 0 : index
    %367 = vector.load %arg2[%c8_288, %c0_289] : memref<9x256xf32, #tpu.memory_space<vmem>>, vector<1x256xf32>
    %368 = vector.broadcast %367 : vector<1x256xf32> to vector<8x256xf32>
    %369 = arith.mulf %366, %368 : vector<8x256xf32>
    %c8_290 = arith.constant 8 : index
    %c0_291 = arith.constant 0 : index
    %c0_292 = arith.constant 0 : index
    %370 = vector.load %arg12[%c8_290, %c0_291, %c0_292] : memref<9x8x8xf32, #tpu.memory_space<vmem>>, vector<1x8x8xf32>
    %371 = vector.shape_cast %370 : vector<1x8x8xf32> to vector<8x8xf32>
    %cst_293 = arith.constant dense<0.000000e+00> : vector<8x256xf32>
    %372 = tpu.matmul %371, %369, %cst_293 {dimension_numbers = #tpu.dot_dimension_numbers<[1], [0], [0], [1], [0, 0, 1, 1], [], []>} : vector<8x8xf32>, vector<8x256xf32>, vector<8x256xf32> -> vector<8x256xf32>
    %373 = arith.addf %365, %372 : vector<8x256xf32>
    %c0_294 = arith.constant 0 : index
    %c0_295 = arith.constant 0 : index
    %374 = vector.load %arg13[%c0_294, %c0_295] : memref<8x1xf32, #tpu.memory_space<vmem>>, vector<8x1xf32>
    %375 = vector.broadcast %374 : vector<8x1xf32> to vector<8x256xf32>
    %376 = arith.addf %373, %375 : vector<8x256xf32>
    %cst_296 = arith.constant 0.000000e+00 : f32
    %377 = vector.broadcast %cst_296 : f32 to vector<8x256xf32>
    %378 = arith.maximumf %376, %377 : vector<8x256xf32>
    %c0_297 = arith.constant 0 : index
    %c0_298 = arith.constant 0 : index
    %379 = vector.load %arg14[%c0_297, %c0_298] : memref<4x8xf32, #tpu.memory_space<vmem>>, vector<4x8xf32>
    %cst_299 = arith.constant dense<0.000000e+00> : vector<4x256xf32>
    %380 = tpu.matmul %379, %378, %cst_299 {dimension_numbers = #tpu.dot_dimension_numbers<[1], [0], [0], [1], [0, 0, 1, 1], [], []>} : vector<4x8xf32>, vector<8x256xf32>, vector<4x256xf32> -> vector<4x256xf32>
    %c0_300 = arith.constant 0 : index
    %c0_301 = arith.constant 0 : index
    %381 = vector.load %arg15[%c0_300, %c0_301] : memref<4x1xf32, #tpu.memory_space<vmem>>, vector<4x1xf32>
    %382 = vector.broadcast %381 : vector<4x1xf32> to vector<4x256xf32>
    %383 = arith.addf %380, %382 : vector<4x256xf32>
    %c0_302 = arith.constant 0 : index
    %c0_303 = arith.constant 0 : index
    %384 = vector.load %arg16[%c0_302, %c0_303] : memref<4x256xf32, #tpu.memory_space<vmem>>, vector<4x256xf32>
    tpu.vector_store %arg16[%c0_302, %c0_303], %383 {strides = array<i32>} : memref<4x256xf32, #tpu.memory_space<vmem>>, vector<4x256xf32>,
    return
  }
  func.func @transform_0(%arg0: i32) -> (i32, i32) {
    %c0_i32 = arith.constant 0 : i32
    %c0_i32_0 = arith.constant 0 : i32
    return %c0_i32, %arg0 : i32, i32
  }
  func.func @transform_1(%arg0: i32) -> (i32, i32) {
    %c0_i32 = arith.constant 0 : i32
    %c0_i32_0 = arith.constant 0 : i32
    %c0_i32_1 = arith.constant 0 : i32
    return %c0_i32, %c0_i32_0 : i32, i32
  }
  func.func @transform_2(%arg0: i32) -> (i32, i32) {
    %c0_i32 = arith.constant 0 : i32
    %c0_i32_0 = arith.constant 0 : i32
    %c0_i32_1 = arith.constant 0 : i32
    return %c0_i32, %c0_i32_0 : i32, i32
  }
  func.func @transform_3(%arg0: i32) -> (i32, i32) {
    %c0_i32 = arith.constant 0 : i32
    %c0_i32_0 = arith.constant 0 : i32
    %c0_i32_1 = arith.constant 0 : i32
    return %c0_i32, %c0_i32_0 : i32, i32
  }
  func.func @transform_4(%arg0: i32) -> (i32, i32, i32) {
    %c0_i32 = arith.constant 0 : i32
    %c0_i32_0 = arith.constant 0 : i32
    %c0_i32_1 = arith.constant 0 : i32
    %c0_i32_2 = arith.constant 0 : i32
    return %c0_i32, %c0_i32_0, %c0_i32_1 : i32, i32, i32
  }
  func.func @transform_5(%arg0: i32) -> (i32, i32) {
    %c0_i32 = arith.constant 0 : i32
    %c0_i32_0 = arith.constant 0 : i32
    %c0_i32_1 = arith.constant 0 : i32
    return %c0_i32, %c0_i32_0 : i32, i32
  }
  func.func @transform_6(%arg0: i32) -> (i32, i32, i32) {
    %c0_i32 = arith.constant 0 : i32
    %c0_i32_0 = arith.constant 0 : i32
    %c0_i32_1 = arith.constant 0 : i32
    %c0_i32_2 = arith.constant 0 : i32
    return %c0_i32, %c0_i32_0, %c0_i32_1 : i32, i32, i32
  }
  func.func @transform_7(%arg0: i32) -> (i32, i32) {
    %c0_i32 = arith.constant 0 : i32
    %c0_i32_0 = arith.constant 0 : i32
    %c0_i32_1 = arith.constant 0 : i32
    return %c0_i32, %c0_i32_0 : i32, i32
  }
  func.func @transform_8(%arg0: i32) -> (i32, i32, i32) {
    %c0_i32 = arith.constant 0 : i32
    %c0_i32_0 = arith.constant 0 : i32
    %c0_i32_1 = arith.constant 0 : i32
    %c0_i32_2 = arith.constant 0 : i32
    return %c0_i32, %c0_i32_0, %c0_i32_1 : i32, i32, i32
  }
  func.func @transform_9(%arg0: i32) -> (i32, i32) {
    %c0_i32 = arith.constant 0 : i32
    %c0_i32_0 = arith.constant 0 : i32
    %c0_i32_1 = arith.constant 0 : i32
    return %c0_i32, %c0_i32_0 : i32, i32
  }
  func.func @transform_10(%arg0: i32) -> (i32, i32, i32) {
    %c0_i32 = arith.constant 0 : i32
    %c0_i32_0 = arith.constant 0 : i32
    %c0_i32_1 = arith.constant 0 : i32
    %c0_i32_2 = arith.constant 0 : i32
    return %c0_i32, %c0_i32_0, %c0_i32_1 : i32, i32, i32
  }
  func.func @transform_11(%arg0: i32) -> (i32, i32, i32) {
    %c0_i32 = arith.constant 0 : i32
    %c0_i32_0 = arith.constant 0 : i32
    %c0_i32_1 = arith.constant 0 : i32
    %c0_i32_2 = arith.constant 0 : i32
    return %c0_i32, %c0_i32_0, %c0_i32_1 : i32, i32, i32
  }
  func.func @transform_12(%arg0: i32) -> (i32, i32) {
    %c0_i32 = arith.constant 0 : i32
    %c0_i32_0 = arith.constant 0 : i32
    %c0_i32_1 = arith.constant 0 : i32
    return %c0_i32, %c0_i32_0 : i32, i32
  }
  func.func @transform_13(%arg0: i32) -> (i32, i32) {
    %c0_i32 = arith.constant 0 : i32
    %c0_i32_0 = arith.constant 0 : i32
    %c0_i32_1 = arith.constant 0 : i32
    return %c0_i32, %c0_i32_0 : i32, i32
  }
  func.func @transform_14(%arg0: i32) -> (i32, i32) {
    %c0_i32 = arith.constant 0 : i32
    %c0_i32_0 = arith.constant 0 : i32
    %c0_i32_1 = arith.constant 0 : i32
    return %c0_i32, %c0_i32_0 : i32, i32
  }
  func.func @transform_15(%arg0: i32) -> (i32, i32) {
    %c0_i32 = arith.constant 0 : i32
    %c0_i32_0 = arith.constant 0 : i32
    return %c0_i32, %arg0 : i32, i32
  }
}

</mosaic_0001>

<bundles_post_ra>
// kernel: _lambda_.1
= control target key start
LH: loop header
LB: loop body
LE: loop exit
PB: predicated region body
PF: predicated region fallthrough
CT: control target
= control target key end

     0   :  { %s5518_s18 = smov 0   ;;  %s6484_s0 = inlined_call_operand.vmem [shape: f32[4,512], index: 0, kind: input, shape index: {}]   ;;  %s6485_s1 = inlined_call_operand.vmem [shape: f32[9,256], index: 1, kind: input, shape index: {}]   ;;  %s6486_s2 = inlined_call_operand.vmem [shape: f32[9,256], index: 2, kind: input, shape index: {}]   ;;  %s6487_s3 = inlined_call_operand.vmem [shape: f32[2,256], index: 3, kind: input, shape index: {}]   ;;  %s6488_s4 = inlined_call_operand.vmem [shape: f32[9,4,4], index: 4, kind: input, shape index: {}]   ;;  %s6489_s5 = inlined_call_operand.vmem [shape: f32[4,1], index: 5, kind: input, shape index: {}]   ;;  %s6490_s6 = inlined_call_operand.vmem [shape: f32[9,8,4], index: 6, kind: input, shape index: {}]   ;;  %s6491_s7 = inlined_call_operand.vmem [shape: f32[8,1], index: 7, kind: input, shape index: {}]   ;;  %s6492_s8 = inlined_call_operand.vmem [shape: f32[9,16,8], index: 8, kind: input, shape index: {}]   ;;  %s6493_s9 = inlined_call_operand.vmem [shape: f32[16,1], index: 9, kind: input, shape index: {}]   ;;  %s6494_s10 = inlined_call_operand.vmem [shape: f32[9,8,16], index: 10, kind: input, shape index: {}]   ;;  %s6495_s11 = inlined_call_operand.vmem [shape: f32[9,8,8], index: 11, kind: input, shape index: {}]   ;;  %s6496_s12 = inlined_call_operand.vmem [shape: f32[8,1], index: 12, kind: input, shape index: {}]   ;;  %s6497_s13 = inlined_call_operand.vmem [shape: f32[4,8], index: 13, kind: input, shape index: {}]   ;;  %s6498_s14 = inlined_call_operand.vmem [shape: f32[4,1], index: 14, kind: input, shape index: {}]   ;;  %s6499_s15 = inlined_call_operand.vmem [shape: f32[4,512], index: 15, kind: output, shape index: {}]  }
   0x1 LB: > { %s5084_s19 = sadd.s32 4294967295, %s5418_s18   ;;  %p5088_p0 = scmp.ge.s32.totalorder %s5418_s18, 1  ;;  %s5418_s18 = sphi %s5518_s18, %s25_s18  }
   0x2   : > { %p438_p1 = scmp.lt.s32.totalorder %s5418_s18, 3 }
   0x4   : > { %p439_p2 = pnand %p5088_p0, %p438_p1 }
   0x5   : > { %s5089_s20 = sshll.u32 (!%p439_p2), %s5084_s19, 1  ;;  %v5420_v0 = vmov (!%p439_p2), 0.0   ;;  %s5421_s25 = smov (!%p439_p2), 17   ;;  %v1433_v3 = vld [vmem:[%s6489_s5] sm:$0xf] (!%p439_p2)  ;;  %v5429_v4 = vmov (!%p439_p2), 0   ;;  %v511_v5 = vlaneseq (!%p439_p2) }
   0x6   : > { %442 = sbr.rel (%p439_p2) target bundleno = 2181 (0x885), region = 80  ;;  %p487_p3 = scmp.lt.s32.totalorder (!%p439_p2), %s5089_s20, 3  ;;  %606 = vmatprep.mubr.f32.mxu0 (!%p439_p2), %v5420_v0  ;;  %1525 = vmatprep.mubr.f32.mxu1 (!%p439_p2), %v5420_v0  ;;  %v516_v10 = vld [vmem:[%s6485_s1] ss:$8 sm:$0x3] (!%p439_p2)  ;;  %vm535_vm2 = vcmask (!%p439_p2), 1043456  }
   0x7   : > { %s5422_s26 = smov (!%p439_p2), 16   ;;  %s5423_s27 = smov (!%p439_p2), 15   ;;  %5409 = vset.pattern.permute.xlu0 (!%p439_p2), %v5429_v4  ;;  %5410 = vset.pattern.permute.xlu1 (!%p439_p2), %v5429_v4  ;;  %v519_v6 = vshrl.u32 (!%p439_p2), %v511_v5, 7  ;;  %v5567_v7 = vand.u32 (!%p439_p2), 127, %v511_v5  ;;  %v530_v24 = vld [vmem:[%s6488_s4] sm:$0xf] (!%p439_p2) }
   0x8   : > { %s5424_s28 = smov (!%p439_p2), 1   ;;  %s6507_s29 = smov (!%p439_p2), 127   ;;  %v5101_v13 = vld [vmem:[%s6485_s1 + $0x1] ss:$8 sm:$0x3] (!%p439_p2)  ;;  %vm531_vm3 = vcmask (!%p439_p2), 31744  }
   0x9   : > { %s6505_s30 = smov (!%p439_p2), 113   ;;  %s6503_s16 = smov (!%p439_p2), 112   ;;  %v5569_v8 = vsub.s32 (!%p439_p2), 0, %v519_v6  ;;  %v5571_v9 = vsub.s32 (!%p439_p2), 1, %v519_v6  ;;  %vm513_vm0 = vcmp.lt.s32.totalorder (!%p439_p2), %v5567_v7, 17  ;;  %vm695_vm1 = vcmp.lt.s32.totalorder (!%p439_p2), %v5567_v7, 16 }
   0xa   : > { %s6501_s17 = smov (!%p439_p2), 111   ;;  %v5106_v26 = vld [vmem:[%s6485_s1 + $0x2] ss:$8 sm:$0x3] (!%p439_p2)  ;;  %vm801_vm4 = vcmp.lt.s32.totalorder (!%p439_p2), %v5567_v7, 15  ;;  %vm907_vm5 = vcmp.lt.s32.totalorder (!%p439_p2), %v5567_v7, 1 }
   0xb   : > { %v5581_v14 = vrot.slane (!%p439_p2), %v516_v10, %v5569_v8  ;;  %v5584_v15 = vrot.slane (!%p439_p2), %v516_v10, %v5571_v9  ;;  %v5588_v17 = vrot.slane (!%p439_p2), %v5101_v13, %v5571_v9  ;;  %v5611_v29 = vrot.slane (!%p439_p2), %v5101_v13, %v5569_v8  ;;  %v5094_v34 = vld [vmem:[%s6488_s4 + $0x10] sm:$0xf] (!%p439_p2)  ;;  %v5111_v36 = vld [vmem:[%s6485_s1 + $0x3] ss:$8 sm:$0x3] (!%p439_p2)  ;;  %s5430_s19 = smov (!%p439_p2), 34  }
   0xc   : > { %v5620_v31 = vrot.slane (!%p439_p2), %v5106_v26, %v5571_v9  ;;  %v5637_v39 = vrot.slane (!%p439_p2), %v5106_v26, %v5569_v8  ;;  %v5643_v41 = vrot.slane (!%p439_p2), %v5111_v36, %v5571_v9  ;;  %v5102_v43 = vld [vmem:[%s6488_s4 + $0x4] sm:$0xf] (!%p439_p2)  ;;  %vm1013_vm6 = vcmp.lt.s32.totalorder (!%p439_p2), %v5567_v7, 127  ;;  %v5107_v53 = vld [vmem:[%s6488_s4 + $0x8] sm:$0xf] (!%p439_p2)  ;;  %s5431_s22 = smov (!%p439_p2), 32  }
   0xd   : > { %s6515_s20 = smov (!%p487_p3, %s5089_s20), 3  ;;  %v5116_v46 = vld [vmem:[%s6485_s1 + $0x5] ss:$8 sm:$0x3]  ;;  %v5660_v49 = vrot.slane %v5111_v36, %v5569_v8  ;;  %vm1119_vm7 = vcmp.lt.s32.totalorder %v5567_v7, 113  ;;  %vm1225_vm8 = vcmp.lt.s32.totalorder %v5567_v7, 112 }
   0xe   : > { %s6500_s21 = sshll.u32 %s6515_s20, 2  ;;  %v5666_v51 = vrot.slane %v5116_v46, %v5571_v9  ;;  %v5121_v56 = vld [vmem:[%s6485_s1 + $0x6] ss:$8 sm:$0x3]  ;;  %v5683_v59 = vrot.slane %v5116_v46, %v5569_v8  ;;  %v5117_v13 = vld [vmem:[%s6488_s4 + $0x14] sm:$0xf] }
   0xf   : > { %s490_s24 = scalar_lea.vmem %s6484_s0, %s6500_s21  ;;  %v5689_v61 = vrot.slane %v5121_v56, %v5571_v9  ;;  %v5112_v63 = vld [vmem:[%s6488_s4 + $0xc] sm:$0xf]  ;;  %v5706_v6 = vrot.slane %v5121_v56, %v5569_v8  ;;  %vm1331_vm9 = vcmp.lt.s32.totalorder %v5567_v7, 111  ;;  %v5122_v26 = vld [vmem:[%s6488_s4 + $0x18] sm:$0xf]  ;;  %s5432_s23 = smov 30  }
  0x10   : > { %v5536_v1 = vld [vmem:[%s490_s24] sm:$0xff]  ;;  %s5433_s24 = smov 2   ;;  %s5434_s21 = smov 126   ;;  %vm2363_vm10 = vcmp.lt.s32.totalorder %v5567_v7, 34  ;;  %vm2553_vm11 = vcmp.lt.s32.totalorder %v5567_v7, 32  ;;  %vm2382_vm12 = vcmask 64512  }
  0x11   : > { %507 = vrot.lane.b32.xlu0 %v5536_v1, %s5421_s25  ;;  %v505_v2 = vcombine.high %v5536_v1, %v5536_v1  ;;  %691 = vrot.lane.b32.xlu1 %v5536_v1, %s5422_s26  ;;  %vm2665_vm13 = vcmp.lt.s32.totalorder %v5567_v7, 30  ;;  %vm2777_vm14 = vcmp.lt.s32.totalorder %v5567_v7, 2  ;;  %vm2889_vm15 = vcmp.lt.s32.totalorder %v5567_v7, 126 }
  0x15   : > { %509 = vrot.lane.b32.xlu0 %v505_v2, %s5421_s25  ;;  %693 = vrot.lane.b32.xlu1 %v505_v2, %s5422_s26 }
  0x19   : > { %799 = vrot.lane.b32.xlu1 %v505_v2, %s5423_s27  ;;  %797 = vrot.lane.b32.xlu0 %v5536_v1, %s5423_s27 }
  0x1d   : > { %905 = vrot.lane.b32.xlu1 %v505_v2, %s5424_s28  ;;  %903 = vrot.lane.b32.xlu0 %v5536_v1, %s5424_s28 }
  0x21   : > { %1011 = vrot.lane.b32.xlu1 %v505_v2, %s6507_s29  ;;  %1009 = vrot.lane.b32.xlu0 %v5536_v1, %s6507_s29 }
  0x25   : > { %1117 = vrot.lane.b32.xlu1 %v505_v2, %s6505_s30  ;;  %1115 = vrot.lane.b32.xlu0 %v5536_v1, %s6505_s30 }
  0x29   : > { %1223 = vrot.lane.b32.xlu1 %v505_v2, %s6503_s16  ;;  %1221 = vrot.lane.b32.xlu0 %v5536_v1, %s6503_s16 }
  0x2d   : > { %1329 = vrot.lane.b32.xlu1 %v505_v2, %s6501_s17  ;;  %1327 = vrot.lane.b32.xlu0 %v5536_v1, %s6501_s17 }
  0x31   : > { %1436 = vperm.xlu0 %5409, %v1433_v3   ;;  %v5126_v3 = vld [vmem:[%s6485_s1 + $0x7] ss:$8 sm:$0x3] }
  0x83   : > { %v508_v11 = vpop.permute.xlu0 %507  ;;  %v692_v12 = vpop.permute.xlu1 %691 }
  0x87   : > { %v510_v16 = vpop.permute.xlu0 %509  ;;  %v694_v18 = vpop.permute.xlu1 %693 }
  0x88   : > { %v515_v19 = vsel %vm513_vm0, %v510_v16, %v508_v11  ;;  %v514_v20 = vsel %vm513_vm0, %v508_v11, %v510_v16  ;;  %v696_v21 = vsel %vm695_vm1, %v692_v12, %v694_v18  ;;  %v697_v30 = vsel %vm695_vm1, %v694_v18, %v692_v12 }
  0x89   : > { %v529_v22 = vmul.f32 %v5584_v15, %v514_v20  ;;  %v528_v23 = vmul.f32 %v5581_v14, %v515_v19  ;;  %v712_v25 = vmul.f32 %v5588_v17, %v696_v21  ;;  %v711_v33 = vmul.f32 %v5611_v29, %v697_v30  ;;  %v5131_v19 = vld [vmem:[%s6485_s1 + $0x10] ss:$8 sm:$0x3] }
  0x8a   : > { %v5712_v11 = vrot.slane %v5126_v3, %v5571_v9  ;;  %v5748_v30 = vrot.slane %v5131_v19, %v5569_v8 }
  0x8b   : > { %5095 = vmatprep.subr.msk.mxu0 %vm535_vm2, %v529_v22  ;;  %v800_v27 = vpop.permute.xlu1 %799  ;;  %v798_v28 = vpop.permute.xlu0 %797  ;;  %v5729_v22 = vrot.slane %v5126_v3, %v5569_v8 }
  0x8c   : > { %5096 = vmatpush1.msk.msra.mxu0 %vm535_vm2, %v528_v23  ;;  %v802_v32 = vsel %vm801_vm4, %v798_v28, %v800_v27  ;;  %v803_v40 = vsel %vm801_vm4, %v800_v27, %v798_v28 }
  0x8d   : > { %5097 = vmatmul.mubr.msk.f32.vlgmr.msra.gmra.mrb[0].mxu0 %vm531_vm3, %v530_v24  ;;  %5098 = vmatprep.subr.msk.mxu0 %vm535_vm2, %v505_v2  ;;  %v818_v35 = vmul.f32 %v5620_v31, %v802_v32  ;;  %v817_v44 = vmul.f32 %v5637_v39, %v803_v40  ;;  %v5735_v24 = vrot.slane %v5131_v19, %v5571_v9 }
  0x8e   : > { %5099 = vmatpush1.msk.msra.mxu0 %vm535_vm2, %v5536_v1  ;;  %684 = vmatprep.mubr.f32.mxu0 %v5420_v0 }
  0x8f   : > { %5103 = vmatprep.subr.msk.mxu0 %vm535_vm2, %v712_v25  ;;  %v906_v37 = vpop.permute.xlu1 %905  ;;  %v904_v38 = vpop.permute.xlu0 %903 }
  0x90   : > { %v908_v42 = vsel %vm907_vm5, %v904_v38, %v906_v37  ;;  %v909_v50 = vsel %vm907_vm5, %v906_v37, %v904_v38 }
  0x91   : > { %v924_v45 = vmul.f32 %v5643_v41, %v908_v42  ;;  %v923_v54 = vmul.f32 %v5660_v49, %v909_v50 }
  0x93   : > { %v1012_v47 = vpop.permute.xlu1 %1011  ;;  %v1010_v48 = vpop.permute.xlu0 %1009 }
  0x94   : > { %v1015_v52 = vsel %vm1013_vm6, %v1012_v47, %v1010_v48  ;;  %v1014_v60 = vsel %vm1013_vm6, %v1010_v48, %v1012_v47 }
  0x95   : > { %5100 = vmatmul.mubr.msk.f32.vlgmr.msra.gmra.mrb[0].mxu0 %vm531_vm3, %v5094_v34  ;;  %v1030_v55 = vmul.f32 %v5666_v51, %v1015_v52  ;;  %v1029_v1 = vmul.f32 %v5683_v59, %v1014_v60  ;;  %v1451_v52 = vld [vmem:[%s6490_s6] sm:$0xff] }
  0x96   : > { %5104 = vmatpush1.msk.msra.mxu0 %vm535_vm2, %v711_v33  ;;  %788 = vmatprep.mubr.f32.mxu0 %v5420_v0  ;;  %v5127_v33 = vld [vmem:[%s6488_s4 + $0x1c] sm:$0xf] }
  0x97   : > { %5108 = vmatprep.subr.msk.mxu0 %vm535_vm2, %v818_v35  ;;  %v1118_v57 = vpop.permute.xlu1 %1117  ;;  %v1116_v58 = vpop.permute.xlu0 %1115  ;;  %v5132_v35 = vld [vmem:[%s6488_s4 + $0x20] sm:$0xf] }
  0x98   : > { %v1121_v62 = vsel %vm1119_vm7, %v1118_v57, %v1116_v58  ;;  %v1120_v10 = vsel %vm1119_vm7, %v1116_v58, %v1118_v57 }
  0x99   : > { %v1136_v2 = vmul.f32 %v5689_v61, %v1121_v62  ;;  %v1135_v16 = vmul.f32 %v5706_v6, %v1120_v10 }
  0x9b   : > { %v1224_v4 = vpop.permute.xlu1 %1223  ;;  %v1222_v5 = vpop.permute.xlu0 %1221 }
  0x9c   : > { %v1227_v12 = vsel %vm1225_vm8, %v1224_v4, %v1222_v5  ;;  %v1226_v23 = vsel %vm1225_vm8, %v1222_v5, %v1224_v4 }
  0x9d   : > { %5105 = vmatmul.mubr.msk.f32.vlgmr.msra.gmra.mrb[0].mxu0 %vm531_vm3, %v5102_v43  ;;  %v1242_v18 = vmul.f32 %v5712_v11, %v1227_v12  ;;  %v1241_v27 = vmul.f32 %v5729_v22, %v1226_v23  ;;  %v2256_v43 = vld [vmem:[%s6491_s7] sm:$0xff]  ;;  %v5143_v12 = vld [vmem:[%s6490_s6 + $0x8] sm:$0xff]  ;;  %v5147_v23 = vld [vmem:[%s6490_s6 + $0x10] sm:$0xff] }
  0x9e   : > { %5109 = vmatpush1.msk.msra.mxu0 %vm535_vm2, %v817_v44  ;;  %894 = vmatprep.mubr.f32.mxu0 %v5420_v0 }
  0x9f   : > { %5113 = vmatprep.subr.msk.mxu0 %vm535_vm2, %v924_v45  ;;  %v1330_v20 = vpop.permute.xlu1 %1329  ;;  %v1328_v21 = vpop.permute.xlu0 %1327 }
  0xa0   : > { %v1333_v25 = vsel %vm1331_vm9, %v1330_v20, %v1328_v21  ;;  %v1332_v32 = vsel %vm1331_vm9, %v1328_v21, %v1330_v20 }
  0xa1   : > { %v1348_v28 = vmul.f32 %v5735_v24, %v1333_v25  ;;  %v1347_v34 = vmul.f32 %v5748_v30, %v1332_v32 }
  0xa5   : > { %5110 = vmatmul.mubr.msk.f32.vlgmr.msra.gmra.mrb[0].mxu0 %vm531_vm3, %v5107_v53 }
  0xa6   : > { %5114 = vmatpush1.msk.msra.mxu0 %vm535_vm2, %v923_v54  ;;  %1000 = vmatprep.mubr.f32.mxu0 %v5420_v0 }
  0xa7   : > { %5118 = vmatprep.subr.msk.mxu0 %vm535_vm2, %v1030_v55 }
  0xad   : > { %5115 = vmatmul.mubr.msk.f32.vlgmr.msra.gmra.mrb[0].mxu0 %vm531_vm3, %v5112_v63  ;;  %v5136_v63 = vld [vmem:[%s6490_s6 + $0x20] sm:$0xff] }
  0xae   : > { %5119 = vmatpush1.msk.msra.mxu0 %vm535_vm2, %v1029_v1  ;;  %1106 = vmatprep.mubr.f32.mxu0 %v5420_v0 }
  0xaf   : > { %5123 = vmatprep.subr.msk.mxu0 %vm535_vm2, %v1136_v2 }
  0xb0   : > { %v1437_v36 = vpop.permute.xlu0 %1436 }
  0xb5   : > { %5120 = vmatmul.mubr.msk.f32.vlgmr.msra.gmra.mrb[0].mxu0 %vm531_vm3, %v5117_v13 }
  0xb6   : > { %5124 = vmatpush1.msk.msra.mxu0 %vm535_vm2, %v1135_v16  ;;  %1212 = vmatprep.mubr.f32.mxu0 %v5420_v0 }
  0xb7   : > { %5128 = vmatprep.subr.msk.mxu0 %vm535_vm2, %v1242_v18 }
  0xbd   : > { %5125 = vmatmul.mubr.msk.f32.vlgmr.msra.gmra.mrb[0].mxu0 %vm531_vm3, %v5122_v26 }
  0xbe   : > { %5129 = vmatpush1.msk.msra.mxu0 %vm535_vm2, %v1241_v27  ;;  %1318 = vmatprep.mubr.f32.mxu0 %v5420_v0 }
  0xbf   : > { %5133 = vmatprep.subr.msk.mxu0 %vm535_vm2, %v1348_v28 }
  0xc5   : > { %5130 = vmatmul.mubr.msk.f32.vlgmr.msra.gmra.mrb[0].mxu0 %vm531_vm3, %v5127_v33 }
  0xc6   : > { %5134 = vmatpush1.msk.msra.mxu0 %vm535_vm2, %v1347_v34  ;;  %1424 = vmatprep.mubr.f32.mxu0 %v5420_v0  ;;  %v5151_v34 = vld [vmem:[%s6490_s6 + $0x18] sm:$0xff] }
  0xcd   : > { %5135 = vmatmul.mubr.msk.f32.vlgmr.msra.gmra.mrb[0].mxu0 %vm531_vm3, %v5132_v35 }
  0xce   : > { %2453 = vmatprep.mubr.f32.mxu0 %v5420_v0 }
 0x1a0   : > { %v1426_v37 = vpop.f32.mrb[0].mxu0 }
 0x1a1   : > { %v1439_v38 = vadd.f32 %v1437_v36, %v1426_v37  ;;  %v1428_v40 = vpop.f32.mrb[1].mxu0 }
 0x1a2   : > { %v1440_v42 = vadd.f32 %v1437_v36, %v1428_v40 }
 0x1a3   : > { %1612 = vrot.lane.b32.xlu0 %v1439_v38, %s5422_s26  ;;  %1443 = vrot.lane.b32.xlu1 %v1439_v38, %s5421_s25 }
 0x1a7   : > { %1704 = vrot.lane.b32.xlu0 %v1439_v38, %s5423_s27  ;;  %1445 = vrot.lane.b32.xlu1 %v1440_v42, %s5421_s25 }
 0x1ab   : > { %1796 = vrot.lane.b32.xlu0 %v1439_v38, %s5424_s28  ;;  %1614 = vrot.lane.b32.xlu1 %v1440_v42, %s5422_s26 }
 0x1af   : > { %1888 = vrot.lane.b32.xlu0 %v1439_v38, %s6507_s29  ;;  %1706 = vrot.lane.b32.xlu1 %v1440_v42, %s5423_s27 }
 0x1b3   : > { %1980 = vrot.lane.b32.xlu0 %v1439_v38, %s6505_s30  ;;  %1798 = vrot.lane.b32.xlu1 %v1440_v42, %s5424_s28 }
 0x1b7   : > { %2072 = vrot.lane.b32.xlu0 %v1439_v38, %s6503_s16  ;;  %1890 = vrot.lane.b32.xlu1 %v1440_v42, %s6507_s29 }
 0x1bb   : > { %2164 = vrot.lane.b32.xlu0 %v1439_v38, %s6501_s17  ;;  %1982 = vrot.lane.b32.xlu1 %v1440_v42, %s6505_s30  ;;  %s5437_s30 = smov 94  }
 0x1bf   : > { %2259 = vperm.xlu0 %5409, %v2256_v43   ;;  %2074 = vrot.lane.b32.xlu1 %v1440_v42, %s6503_s16  ;;  %v5155_v43 = vld [vmem:[%s6490_s6 + $0x28] sm:$0xff] }
 0x1c3   : > { %2166 = vrot.lane.b32.xlu1 %v1440_v42, %s6501_s17  ;;  %s5435_s17 = smov 98  }
 0x215   : > { %v1444_v44 = vpop.permute.xlu1 %1443  ;;  %v1613_v53 = vpop.permute.xlu0 %1612 }
 0x219   : > { %v1446_v45 = vpop.permute.xlu1 %1445  ;;  %v1705_v58 = vpop.permute.xlu0 %1704 }
 0x21a   : > { %v1447_v46 = vsel %vm513_vm0, %v1444_v44, %v1446_v45  ;;  %v1448_v47 = vsel %vm513_vm0, %v1446_v45, %v1444_v44 }
 0x21b   : > { %v1449_v48 = vmul.f32 %v1448_v47, %v5581_v14  ;;  %v1450_v50 = vmul.f32 %v1447_v46, %v5584_v15 }
 0x21d   : > { %5137 = vmatprep.subr.msk.mxu1 %vm535_vm2, %v1450_v50  ;;  %v1615_v54 = vpop.permute.xlu1 %1614  ;;  %v1797_v4 = vpop.permute.xlu0 %1796 }
 0x21e   : > { %v1616_v55 = vsel %vm695_vm1, %v1613_v53, %v1615_v54  ;;  %5138 = vmatpush1.msk.msra.mxu1 %vm535_vm2, %v1449_v48  ;;  %v1617_v60 = vsel %vm695_vm1, %v1615_v54, %v1613_v53 }
 0x21f   : > { %v1619_v56 = vmul.f32 %v1616_v55, %v5588_v17  ;;  %5139 = vmatmul.mubr.msk.f32.vlgmr.msra.gmra.mrb[0].mxu1 %vm531_vm3, %v1451_v52  ;;  %5140 = vmatprep.subr.msk.mxu1 %vm535_vm2, %v1440_v42  ;;  %v1618_v1 = vmul.f32 %v1617_v60, %v5611_v29  ;;  %v5159_v52 = vld [vmem:[%s6490_s6 + $0x30] sm:$0xff] }
 0x220   : > { %5141 = vmatpush1.msk.msra.mxu1 %vm535_vm2, %v1439_v38  ;;  %1605 = vmatprep.mubr.f32.mxu1 %v5420_v0 }
 0x221   : > { %5144 = vmatprep.subr.msk.mxu1 %vm535_vm2, %v1619_v56  ;;  %v1707_v57 = vpop.permute.xlu1 %1706  ;;  %v1889_v19 = vpop.permute.xlu0 %1888  ;;  %v5163_v56 = vld [vmem:[%s6490_s6 + $0x38] sm:$0xff] }
 0x222   : > { %v1708_v62 = vsel %vm801_vm4, %v1705_v58, %v1707_v57  ;;  %v1709_v5 = vsel %vm801_vm4, %v1707_v57, %v1705_v58  ;;  %v5167_v58 = vld [vmem:[%s6490_s6 + $0x40] sm:$0xff] }
 0x223   : > { %v1711_v2 = vmul.f32 %v1708_v62, %v5620_v31  ;;  %v1710_v13 = vmul.f32 %v1709_v5, %v5637_v39 }
 0x225   : > { %v1799_v3 = vpop.permute.xlu1 %1798  ;;  %v1981_v28 = vpop.permute.xlu0 %1980 }
 0x226   : > { %v1800_v10 = vsel %vm907_vm5, %v1797_v4, %v1799_v3  ;;  %v1801_v20 = vsel %vm907_vm5, %v1799_v3, %v1797_v4 }
 0x227   : > { %5142 = vmatmul.mubr.msk.f32.vlgmr.msra.gmra.mrb[0].mxu1 %vm531_vm3, %v5136_v63  ;;  %v1803_v16 = vmul.f32 %v1800_v10, %v5643_v41  ;;  %v1802_v25 = vmul.f32 %v1801_v20, %v5660_v49  ;;  %v499_v10 = vld [vmem:[%s6487_s3] ss:$2 sm:$0x3] }
 0x228   : > { %5145 = vmatpush1.msk.msra.mxu1 %vm535_vm2, %v1618_v1  ;;  %1695 = vmatprep.mubr.f32.mxu1 %v5420_v0  ;;  %v2288_v20 = vrot.slane %v499_v10, %v5571_v9 }
 0x229   : > { %5148 = vmatprep.subr.msk.mxu1 %vm535_vm2, %v1711_v2  ;;  %v1891_v18 = vpop.permute.xlu1 %1890  ;;  %v2073_v38 = vpop.permute.xlu0 %2072 }
 0x22a   : > { %v1893_v21 = vsel %vm1013_vm6, %v1891_v18, %v1889_v19  ;;  %v1892_v32 = vsel %vm1013_vm6, %v1889_v19, %v1891_v18  ;;  %v2284_v19 = vrot.slane %v499_v10, %v5569_v8 }
 0x22b   : > { %v1895_v26 = vmul.f32 %v1893_v21, %v5666_v51  ;;  %v1894_v35 = vmul.f32 %v1892_v32, %v5683_v59 }
 0x22d   : > { %v1983_v27 = vpop.permute.xlu1 %1982  ;;  %v2165_v47 = vpop.permute.xlu0 %2164 }
 0x22e   : > { %v1985_v33 = vsel %vm1119_vm7, %v1983_v27, %v1981_v28  ;;  %v1984_v40 = vsel %vm1119_vm7, %v1981_v28, %v1983_v27 }
 0x22f   : > { %5146 = vmatmul.mubr.msk.f32.vlgmr.msra.gmra.mrb[0].mxu1 %vm531_vm3, %v5143_v12  ;;  %v1987_v36 = vmul.f32 %v1985_v33, %v5689_v61  ;;  %v1986_v44 = vmul.f32 %v1984_v40, %v5706_v6 }
 0x230   : > { %5149 = vmatpush1.msk.msra.mxu1 %vm535_vm2, %v1710_v13  ;;  %1787 = vmatprep.mubr.f32.mxu1 %v5420_v0  ;;  %v2293_v13 = vsub.f32 1.0, %v499_v10 }
 0x231   : > { %5152 = vmatprep.subr.msk.mxu1 %vm535_vm2, %v1803_v16  ;;  %v2075_v37 = vpop.permute.xlu1 %2074 }
 0x232   : > { %v2077_v42 = vsel %vm1225_vm8, %v2075_v37, %v2073_v38  ;;  %v2076_v48 = vsel %vm1225_vm8, %v2073_v38, %v2075_v37  ;;  %v2304_v27 = vrot.slane %v2293_v13, %v5571_v9 }
 0x233   : > { %v2079_v45 = vmul.f32 %v2077_v42, %v5712_v11  ;;  %v2078_v53 = vmul.f32 %v2076_v48, %v5729_v22 }
 0x235   : > { %v2167_v46 = vpop.permute.xlu1 %2166 }
 0x236   : > { %v2169_v50 = vsel %vm1331_vm9, %v2167_v46, %v2165_v47  ;;  %v2168_v55 = vsel %vm1331_vm9, %v2165_v47, %v2167_v46 }
 0x237   : > { %5150 = vmatmul.mubr.msk.f32.vlgmr.msra.gmra.mrb[0].mxu1 %vm531_vm3, %v5147_v23  ;;  %v2171_v54 = vmul.f32 %v2169_v50, %v5735_v24  ;;  %v2170_v57 = vmul.f32 %v2168_v55, %v5748_v30 }
 0x238   : > { %5153 = vmatpush1.msk.msra.mxu1 %vm535_vm2, %v1802_v25  ;;  %1879 = vmatprep.mubr.f32.mxu1 %v5420_v0 }
 0x239   : > { %5156 = vmatprep.subr.msk.mxu1 %vm535_vm2, %v1895_v26  ;;  %v2300_v26 = vrot.slane %v2293_v13, %v5569_v8 }
 0x23e   : > { %v2260_v60 = vpop.permute.xlu0 %2259 }
 0x23f   : > { %5154 = vmatmul.mubr.msk.f32.vlgmr.msra.gmra.mrb[0].mxu1 %vm531_vm3, %v5151_v34 }
 0x240   : > { %5157 = vmatpush1.msk.msra.mxu1 %vm535_vm2, %v1894_v35  ;;  %1971 = vmatprep.mubr.f32.mxu1 %v5420_v0 }
 0x241   : > { %5160 = vmatprep.subr.msk.mxu1 %vm535_vm2, %v1987_v36 }
 0x247   : > { %5158 = vmatmul.mubr.msk.f32.vlgmr.msra.gmra.mrb[0].mxu1 %vm531_vm3, %v5155_v43 }
 0x248   : > { %5161 = vmatpush1.msk.msra.mxu1 %vm535_vm2, %v1986_v44  ;;  %2063 = vmatprep.mubr.f32.mxu1 %v5420_v0  ;;  %v5093_v44 = vld [vmem:[%s6487_s3 + $0x1] ss:$2 sm:$0x3] }
 0x249   : > { %5164 = vmatprep.subr.msk.mxu1 %vm535_vm2, %v2079_v45  ;;  %v2338_v47 = vsub.f32 1.0, %v5093_v44 }
 0x24f   : > { %5162 = vmatmul.mubr.msk.f32.vlgmr.msra.gmra.mrb[0].mxu1 %vm531_vm3, %v5159_v52  ;;  %v2329_v52 = vrot.slane %v5093_v44, %v5569_v8 }
 0x250   : > { %5165 = vmatpush1.msk.msra.mxu1 %vm535_vm2, %v2078_v53  ;;  %2155 = vmatprep.mubr.f32.mxu1 %v5420_v0  ;;  %v2333_v53 = vrot.slane %v5093_v44, %v5571_v9 }
 0x251   : > { %5168 = vmatprep.subr.msk.mxu1 %vm535_vm2, %v2171_v54 }
 0x257   : > { %5166 = vmatmul.mubr.msk.f32.vlgmr.msra.gmra.mrb[0].mxu1 %vm531_vm3, %v5163_v56 }
 0x258   : > { %5169 = vmatpush1.msk.msra.mxu1 %vm535_vm2, %v2170_v57  ;;  %2247 = vmatprep.mubr.f32.mxu1 %v5420_v0  ;;  %v2345_v57 = vrot.slane %v2338_v47, %v5569_v8  ;;  %vm3001_vm2 = vcmp.lt.s32.totalorder %v5567_v7, 98 }
 0x25f   : > { %5170 = vmatmul.mubr.msk.f32.vlgmr.msra.gmra.mrb[0].mxu1 %vm531_vm3, %v5167_v58  ;;  %v2349_v58 = vrot.slane %v2338_v47, %v5571_v9  ;;  %vm3113_vm3 = vcmp.lt.s32.totalorder %v5567_v7, 96 }
 0x260   : > { %3440 = vmatprep.mubr.f32.mxu1 %v5420_v0 }
 0x332   : > { %v2249_v62 = vpop.f32.mrb[0].mxu1 }
 0x333   : > { %v2262_v63 = vadd.f32 %v2260_v60, %v2249_v62  ;;  %v2251_v1 = vpop.f32.mrb[1].mxu1 }
 0x334   : > { %v2263_v2 = vadd.f32 %v2260_v60, %v2251_v1 }
 0x335   : > { %v5895_v3 = vmax.f32 %v2262_v63, 0.0 }
 0x336   : > { %v5897_v4 = vmax.f32 %v2263_v2, 0.0 }
 0x337   : > { %2266 = vrot.lane.b32.xlu1 %v5895_v3, %s6507_s29 }
 0x338   : > { %2268 = vrot.lane.b32.xlu0 %v5897_v4, %s6507_s29 }
 0x33b   : > { %2272 = vrot.lane.b32.xlu1 %v5895_v3, %s5424_s28 }
 0x33c   : > { %2274 = vrot.lane.b32.xlu0 %v5897_v4, %s5424_s28 }
 0x3a9   : > { %v2267_v5 = vpop.permute.xlu1 %2266 }
 0x3aa   : > { %v2269_v12 = vpop.permute.xlu0 %2268 }
 0x3ab   : > { %v5912_v16 = vsel %vm1013_vm6, %v2267_v5, %v2269_v12  ;;  %v5916_v18 = vsel %vm1013_vm6, %v2269_v12, %v2267_v5 }
 0x3ac   : > { %v2278_v23 = vmax.f32 %v5895_v3, %v5912_v16  ;;  %v2279_v25 = vmax.f32 %v5897_v4, %v5916_v18 }
 0x3ad   : > { %v2273_v21 = vpop.permute.xlu1 %2272 }
 0x3ae   : > { %v2275_v28 = vpop.permute.xlu0 %2274  ;;  %v2291_v36 = vmul.f32 %v2284_v19, %v2278_v23  ;;  %v2292_v37 = vmul.f32 %v2288_v20, %v2279_v25  ;;  %v3333_v23 = vld [vmem:[%s6493_s9] sm:$0xff] }
 0x3af   : > { %v5928_v32 = vsel %vm907_vm5, %v2273_v21, %v2275_v28  ;;  %v5932_v33 = vsel %vm907_vm5, %v2275_v28, %v2273_v21  ;;  %v3334_v21 = vld [vmem:[%s6493_s9 + $0x8] sm:$0xff] }
 0x3b0   : > { %v2294_v34 = vmax.f32 %v5895_v3, %v5932_v33  ;;  %v2295_v35 = vmax.f32 %v5897_v4, %v5928_v32  ;;  %v2366_v25 = vld [vmem:[%s6486_s2] ss:$8 sm:$0x3]  ;;  %v5177_v28 = vld [vmem:[%s6486_s2 + $0x1] ss:$8 sm:$0x3] }
 0x3b2   : > { %v2307_v38 = vmul.f32 %v2300_v26, %v2294_v34  ;;  %v2308_v40 = vmul.f32 %v2304_v27, %v2295_v35  ;;  %v2371_v26 = vrot.slane %v2366_v25, %v5569_v8  ;;  %v2375_v27 = vrot.slane %v2366_v25, %v5571_v9  ;;  %v5192_v25 = vld [vmem:[%s6486_s2 + $0x5] ss:$8 sm:$0x3] }
 0x3b4   : > { %v2309_v42 = vadd.f32 %v2307_v38, %v2291_v36  ;;  %v2310_v43 = vadd.f32 %v2308_v40, %v2292_v37 }
 0x3b6   : > { %2311 = vrot.lane.b32.xlu1 %v2309_v42, %s6503_s16  ;;  %2313 = vrot.lane.b32.xlu0 %v2310_v43, %s6503_s16  ;;  %s5436_s16 = smov 96  }
 0x3ba   : > { %2317 = vrot.lane.b32.xlu1 %v2309_v42, %s5422_s26  ;;  %2319 = vrot.lane.b32.xlu0 %v2310_v43, %s5422_s26 }
 0x428   : > { %v2312_v45 = vpop.permute.xlu1 %2311  ;;  %v2314_v46 = vpop.permute.xlu0 %2313 }
 0x429   : > { %v2315_v48 = vsel %vm1225_vm8, %v2312_v45, %v2314_v46  ;;  %v2316_v50 = vsel %vm1225_vm8, %v2314_v46, %v2312_v45 }
 0x42a   : > { %v2323_v54 = vmax.f32 %v2309_v42, %v2315_v48  ;;  %v2324_v55 = vmax.f32 %v2310_v43, %v2316_v50  ;;  %v5182_v48 = vld [vmem:[%s6486_s2 + $0x2] ss:$8 sm:$0x3] }
 0x42b   : > { %v2381_v50 = vld [vmem:[%s6492_s8 + $0x8] sm:$0xff] }
 0x42c   : > { %v2318_v56 = vpop.permute.xlu1 %2317  ;;  %v2320_v60 = vpop.permute.xlu0 %2319  ;;  %v2336_v5 = vmul.f32 %v2329_v52, %v2323_v54  ;;  %v2337_v10 = vmul.f32 %v2333_v53, %v2324_v55  ;;  %v2562_v54 = vrot.slane %v5177_v28, %v5569_v8 }
 0x42d   : > { %v2321_v62 = vsel %vm695_vm1, %v2318_v56, %v2320_v60  ;;  %v2322_v63 = vsel %vm695_vm1, %v2320_v60, %v2318_v56  ;;  %v2678_v56 = vrot.slane %v5182_v48, %v5571_v9 }
 0x42e   : > { %v2339_v1 = vmax.f32 %v2309_v42, %v2322_v63  ;;  %v2340_v2 = vmax.f32 %v2310_v43, %v2321_v62  ;;  %v2566_v42 = vrot.slane %v5177_v28, %v5571_v9  ;;  %v2380_v43 = vld [vmem:[%s6492_s8] sm:$0xff] }
 0x42f   : > { %v5187_v63 = vld [vmem:[%s6486_s2 + $0x3] ss:$8 sm:$0x3] }
 0x430   : > { %v2352_v12 = vmul.f32 %v2345_v57, %v2339_v1  ;;  %v2353_v13 = vmul.f32 %v2349_v58, %v2340_v2  ;;  %v5171_v58 = vld [vmem:[%s6492_s8 + $0x40] sm:$0xff]  ;;  %v5172_v1 = vld [vmem:[%s6492_s8 + $0x48] sm:$0xff] }
 0x432   : > { %v2354_v19 = vadd.f32 %v2352_v12, %v2336_v5  ;;  %v2355_v20 = vadd.f32 %v2353_v13, %v2337_v10  ;;  %v2674_v10 = vrot.slane %v5182_v48, %v5569_v8  ;;  %v2790_v13 = vrot.slane %v5187_v63, %v5571_v9 }
 0x434   : > { %2359 = vrot.lane.b32.xlu1 %v2354_v19, %s5430_s19  ;;  %2361 = vrot.lane.b32.xlu0 %v2355_v20, %s5430_s19 }
 0x438   : > { %2549 = vrot.lane.b32.xlu1 %v2354_v19, %s5431_s22  ;;  %2551 = vrot.lane.b32.xlu0 %v2355_v20, %s5431_s22  ;;  %s6509_s22 = smov 127  }
 0x43c   : > { %2661 = vrot.lane.b32.xlu1 %v2354_v19, %s5432_s23  ;;  %2663 = vrot.lane.b32.xlu0 %v2355_v20, %s5432_s23  ;;  %s6510_s23 = smov 113  }
 0x440   : > { %2773 = vrot.lane.b32.xlu1 %v2354_v19, %s5433_s24  ;;  %2775 = vrot.lane.b32.xlu0 %v2355_v20, %s5433_s24  ;;  %s6513_s24 = sshll.u32 %s6515_s20, 2 }
 0x441   : > { %s496_s29 = scalar_lea.vmem %s6499_s15, %s6513_s24 }
 0x444   : > { %2885 = vrot.lane.b32.xlu1 %v2354_v19, %s5434_s21  ;;  %2887 = vrot.lane.b32.xlu0 %v2355_v20, %s5434_s21  ;;  %s6511_s21 = smov 112  }
 0x448   : > { %2997 = vrot.lane.b32.xlu1 %v2354_v19, %s5435_s17  ;;  %2999 = vrot.lane.b32.xlu0 %v2355_v20, %s5435_s17 }
 0x44c   : > { %3109 = vrot.lane.b32.xlu1 %v2354_v19, %s5436_s16  ;;  %3111 = vrot.lane.b32.xlu0 %v2355_v20, %s5436_s16 }
 0x450   : > { %3221 = vrot.lane.b32.xlu1 %v2354_v19, %s5437_s30  ;;  %3223 = vrot.lane.b32.xlu0 %v2355_v20, %s5437_s30 }
 0x454   : > { %3342 = vperm.xlu0 %5409, %v3334_v21   ;;  %3337 = vperm.xlu1 %5410, %v3333_v23  }
 0x4a6   : > { %v2360_v34 = vpop.permute.xlu1 %2359  ;;  %v2362_v35 = vpop.permute.xlu0 %2361 }
 0x4a7   : > { %v2364_v36 = vsel %vm2363_vm10, %v2360_v34, %v2362_v35  ;;  %v2365_v37 = vsel %vm2363_vm10, %v2362_v35, %v2360_v34  ;;  %v2786_v34 = vrot.slane %v5187_v63, %v5569_v8  ;;  %vm3225_vm10 = vcmp.lt.s32.totalorder %v5567_v7, 94 }
 0x4a8   : > { %v2378_v38 = vmul.f32 %v2371_v26, %v2365_v37  ;;  %v2379_v40 = vmul.f32 %v2375_v27, %v2364_v36  ;;  %v5179_v26 = vld [vmem:[%s6492_s8 + $0x18] sm:$0xff]  ;;  %v2902_v36 = vrot.slane %v5192_v25, %v5571_v9 }
 0x4aa   : > { %v2550_v44 = vpop.permute.xlu1 %2549  ;;  %2389 = vmatprep.subr.mxu0 %v2379_v40  ;;  %v2552_v45 = vpop.permute.xlu0 %2551 }
 0x4ab   : > { %v2554_v46 = vsel %vm2553_vm11, %v2550_v44, %v2552_v45  ;;  %2390 = vmatpush1.msra.mxu0 %v2378_v38  ;;  %v2555_v55 = vsel %vm2553_vm11, %v2552_v45, %v2550_v44  ;;  %v5183_v38 = vld [vmem:[%s6492_s8 + $0x20] sm:$0xff]  ;;  %v5184_v44 = vld [vmem:[%s6492_s8 + $0x28] sm:$0xff]  ;;  %vm3372_vm11 = vcmask 130048  }
 0x4ac   : > { %v2570_v47 = vmul.f32 %v2566_v42, %v2554_v46  ;;  %5173 = vmatmul.mubr.msk.f32.vlgmr.msra.gmra.mrb[2].mxu0 %vm2382_vm12, %v2380_v43  ;;  %2472 = vmatprep.subr.mxu0 %v2355_v20  ;;  %v2569_v60 = vmul.f32 %v2562_v54, %v2555_v55  ;;  %v5178_v20 = vld [vmem:[%s6492_s8 + $0x10] sm:$0xff]  ;;  %v5197_v43 = vld [vmem:[%s6486_s2 + $0x6] ss:$8 sm:$0x3] }
 0x4ad   : > { %2473 = vmatpush1.msra.mxu0 %v2354_v19  ;;  %2459 = vmatprep.mubr.f32.mxu0 %v5420_v0 }
 0x4ae   : > { %v2662_v52 = vpop.permute.xlu1 %2661  ;;  %2580 = vmatprep.subr.mxu0 %v2570_v47  ;;  %v2664_v53 = vpop.permute.xlu0 %2663  ;;  %v2898_v47 = vrot.slane %v5192_v25, %v5569_v8 }
 0x4af   : > { %v2666_v57 = vsel %vm2665_vm13, %v2662_v52, %v2664_v53  ;;  %v2667_v12 = vsel %vm2665_vm13, %v2664_v53, %v2662_v52  ;;  %v5188_v53 = vld [vmem:[%s6492_s8 + $0x30] sm:$0xff] }
 0x4b0   : > { %5174 = vmatmul.mubr.msk.f32.gmra.mrb[4].mxu0 %vm2382_vm12, %v2381_v50  ;;  %v2682_v62 = vmul.f32 %v2678_v56, %v2666_v57  ;;  %v2681_v21 = vmul.f32 %v2674_v10, %v2667_v12  ;;  %v3014_v50 = vrot.slane %v5197_v43, %v5571_v9  ;;  %v5202_v56 = vld [vmem:[%s6486_s2 + $0x7] ss:$8 sm:$0x3]  ;;  %v5189_v57 = vld [vmem:[%s6492_s8 + $0x38] sm:$0xff] }
 0x4b1   : > { %2536 = vmatprep.mubr.f32.mxu0 %v5420_v0 }
 0x4b2   : > { %v2774_v2 = vpop.permute.xlu1 %2773  ;;  %v2776_v5 = vpop.permute.xlu0 %2775 }
 0x4b3   : > { %v2778_v19 = vsel %vm2777_vm14, %v2774_v2, %v2776_v5  ;;  %v2779_v35 = vsel %vm2777_vm14, %v2776_v5, %v2774_v2  ;;  %v5193_v5 = vld [vmem:[%s6492_s8 + $0x50] sm:$0xff] }
 0x4b4   : > { %5175 = vmatmul.mubr.msk.f32.vlgmr.msra.gmra.mrb[2].mxu0 %vm2382_vm12, %v5171_v58  ;;  %v2794_v23 = vmul.f32 %v2790_v13, %v2778_v19  ;;  %v2793_v40 = vmul.f32 %v2786_v34, %v2779_v35  ;;  %v5207_v13 = vld [vmem:[%s6486_s2 + $0x10] ss:$8 sm:$0x3] }
 0x4b5   : > { %2581 = vmatpush1.msra.mxu0 %v2569_v60  ;;  %2542 = vmatprep.mubr.f32.mxu0 %v5420_v0  ;;  %v5194_v19 = vld [vmem:[%s6492_s8 + $0x58] sm:$0xff] }
 0x4b6   : > { %2692 = vmatprep.subr.mxu0 %v2682_v62  ;;  %v2886_v27 = vpop.permute.xlu1 %2885  ;;  %v2888_v28 = vpop.permute.xlu0 %2887  ;;  %v3010_v62 = vrot.slane %v5197_v43, %v5569_v8  ;;  %v5209_v43 = vld [vmem:[%s6492_s8 + $0x88] sm:$0xff] }
 0x4b7   : > { %v2891_v37 = vsel %vm2889_vm15, %v2888_v28, %v2886_v27  ;;  %v2890_v48 = vsel %vm2889_vm15, %v2886_v27, %v2888_v28  ;;  %v5198_v28 = vld [vmem:[%s6492_s8 + $0x60] sm:$0xff] }
 0x4b8   : > { %5176 = vmatmul.mubr.msk.f32.gmra.mrb[4].mxu0 %vm2382_vm12, %v5172_v1  ;;  %v2906_v42 = vmul.f32 %v2902_v36, %v2891_v37  ;;  %v2905_v54 = vmul.f32 %v2898_v47, %v2890_v48  ;;  %v3126_v1 = vrot.slane %v5202_v56, %v5571_v9  ;;  %v3234_v36 = vrot.slane %v5207_v13, %v5569_v8 }
 0x4b9   : > { %2644 = vmatprep.mubr.f32.mxu0 %v5420_v0 }
 0x4ba   : > { %v2998_v45 = vpop.permute.xlu1 %2997  ;;  %v3000_v46 = vpop.permute.xlu0 %2999 }
 0x4bb   : > { %v3003_v52 = vsel %vm3001_vm2, %v3000_v46, %v2998_v45  ;;  %v3002_v63 = vsel %vm3001_vm2, %v2998_v45, %v3000_v46 }
 0x4bc   : > { %5180 = vmatmul.mubr.msk.f32.vlgmr.msra.gmra.mrb[2].mxu0 %vm2382_vm12, %v5178_v20  ;;  %v3018_v55 = vmul.f32 %v3014_v50, %v3003_v52  ;;  %v3017_v10 = vmul.f32 %v3010_v62, %v3002_v63 }
 0x4bd   : > { %2693 = vmatpush1.msra.mxu0 %v2681_v21  ;;  %2650 = vmatprep.mubr.f32.mxu0 %v5420_v0 }
 0x4be   : > { %2804 = vmatprep.subr.mxu0 %v2794_v23  ;;  %v3110_v58 = vpop.permute.xlu1 %3109  ;;  %v3112_v60 = vpop.permute.xlu0 %3111  ;;  %v3122_v23 = vrot.slane %v5202_v56, %v5569_v8  ;;  %v5204_v8 = vld [vmem:[%s6492_s8 + $0x78] sm:$0xff] }
 0x4bf   : > { %v3115_v2 = vsel %vm3113_vm3, %v3112_v60, %v3110_v58  ;;  %v3114_v25 = vsel %vm3113_vm3, %v3110_v58, %v3112_v60 }
 0x4c0   : > { %5181 = vmatmul.mubr.msk.f32.gmra.mrb[4].mxu0 %vm2382_vm12, %v5179_v26  ;;  %v3130_v12 = vmul.f32 %v3126_v1, %v3115_v2  ;;  %v3238_v26 = vrot.slane %v5207_v13, %v5571_v9  ;;  %v3129_v34 = vmul.f32 %v3122_v23, %v3114_v25  ;;  %v5199_v9 = vld [vmem:[%s6492_s8 + $0x68] sm:$0xff]  ;;  %v4932_v1 = vld [vmem:[%s6496_s12] sm:$0xff] }
 0x4c1   : > { %2756 = vmatprep.mubr.f32.mxu0 %v5420_v0  ;;  %v4943_v2 = vld [vmem:[%s6498_s14] sm:$0xf] }
 0x4c2   : > { %v3222_v20 = vpop.permute.xlu1 %3221  ;;  %v3224_v21 = vpop.permute.xlu0 %3223 }
 0x4c3   : > { %v3227_v27 = vsel %vm3225_vm10, %v3224_v21, %v3222_v20  ;;  %v3226_v37 = vsel %vm3225_vm10, %v3222_v20, %v3224_v21 }
 0x4c4   : > { %5185 = vmatmul.mubr.msk.f32.vlgmr.msra.gmra.mrb[2].mxu0 %vm2382_vm12, %v5183_v38  ;;  %v3242_v35 = vmul.f32 %v3238_v26, %v3227_v27  ;;  %v5203_v38 = vld [vmem:[%s6492_s8 + $0x70] sm:$0xff] }
 0x4c5   : > { %2805 = vmatpush1.msra.mxu0 %v2793_v40  ;;  %2762 = vmatprep.mubr.f32.mxu0 %v5420_v0  ;;  %v3241_v40 = vmul.f32 %v3234_v36, %v3226_v37 }
 0x4c6   : > { %2916 = vmatprep.subr.mxu0 %v2906_v42  ;;  %v5208_v42 = vld [vmem:[%s6492_s8 + $0x80] sm:$0xff] }
 0x4c8   : > { %5186 = vmatmul.mubr.msk.f32.gmra.mrb[4].mxu0 %vm2382_vm12, %v5184_v44 }
 0x4c9   : > { %2868 = vmatprep.mubr.f32.mxu0 %v5420_v0 }
 0x4cc   : > { %5190 = vmatmul.mubr.msk.f32.vlgmr.msra.gmra.mrb[2].mxu0 %vm2382_vm12, %v5188_v53 }
 0x4cd   : > { %2917 = vmatpush1.msra.mxu0 %v2905_v54  ;;  %2874 = vmatprep.mubr.f32.mxu0 %v5420_v0 }
 0x4ce   : > { %3028 = vmatprep.subr.mxu0 %v3018_v55 }
 0x4d0   : > { %5191 = vmatmul.mubr.msk.f32.gmra.mrb[4].mxu0 %vm2382_vm12, %v5189_v57 }
 0x4d1   : > { %2980 = vmatprep.mubr.f32.mxu0 %v5420_v0 }
 0x4d3   : > { %v3338_v44 = vpop.permute.xlu1 %3337  ;;  %v3343_v52 = vpop.permute.xlu0 %3342 }
 0x4d4   : > { %5195 = vmatmul.mubr.msk.f32.vlgmr.msra.gmra.mrb[2].mxu0 %vm2382_vm12, %v5193_v5 }
 0x4d5   : > { %3029 = vmatpush1.msra.mxu0 %v3017_v10  ;;  %2986 = vmatprep.mubr.f32.mxu0 %v5420_v0 }
 0x4d6   : > { %3140 = vmatprep.subr.mxu0 %v3130_v12 }
 0x4d8   : > { %5196 = vmatmul.mubr.msk.f32.gmra.mrb[4].mxu0 %vm2382_vm12, %v5194_v19 }
 0x4d9   : > { %3092 = vmatprep.mubr.f32.mxu0 %v5420_v0 }
 0x4dc   : > { %5200 = vmatmul.mubr.msk.f32.vlgmr.msra.gmra.mrb[2].mxu0 %vm2382_vm12, %v5198_v28 }
 0x4dd   : > { %3141 = vmatpush1.msra.mxu0 %v3129_v34  ;;  %3098 = vmatprep.mubr.f32.mxu0 %v5420_v0 }
 0x4de   : > { %3252 = vmatprep.subr.mxu0 %v3242_v35 }
 0x4e0   : > { %5201 = vmatmul.mubr.msk.f32.gmra.mrb[4].mxu0 %vm2382_vm12, %v5199_v9 }
 0x4e1   : > { %3204 = vmatprep.mubr.f32.mxu0 %v5420_v0 }
 0x4e4   : > { %5205 = vmatmul.mubr.msk.f32.vlgmr.msra.gmra.mrb[2].mxu0 %vm2382_vm12, %v5203_v38 }
 0x4e5   : > { %3253 = vmatpush1.msra.mxu0 %v3241_v40  ;;  %3210 = vmatprep.mubr.f32.mxu0 %v5420_v0  ;;  %v3371_v40 = vld [vmem:[%s6494_s10] sm:$0xff] }
 0x4e8   : > { %5206 = vmatmul.mubr.msk.f32.gmra.mrb[4].mxu0 %vm2382_vm12, %v5204_v8 }
 0x4e9   : > { %3316 = vmatprep.mubr.f32.mxu0 %v5420_v0 }
 0x4ec   : > { %5210 = vmatmul.mubr.msk.f32.vlgmr.msra.gmra.mrb[2].mxu0 %vm2382_vm12, %v5208_v42 }
 0x4ed   : > { %3322 = vmatprep.mubr.f32.mxu0 %v5420_v0 }
 0x4f0   : > { %5211 = vmatmul.mubr.msk.f32.gmra.mrb[4].mxu0 %vm2382_vm12, %v5209_v43 }
 0x4f1   : > { %5016 = vmatprep.mubr.f32.mxu0 %v5420_v0 }
 0x5bf   : > { %v3318_v45 = vpop.f32.mrb[2].mxu0 }
 0x5c0   : > { %v3345_v46 = vadd.f32 %v3338_v44, %v3318_v45  ;;  %v3320_v47 = vpop.f32.mrb[3].mxu0 }
 0x5c1   : > { %v3346_v50 = vadd.f32 %v3338_v44, %v3320_v47 }
 0x5c2   : > { %v6129_v48 = vmax.f32 %v3345_v46, 0.0 }
 0x5c3   : > { %v3324_v53 = vpop.f32.mrb[4].mxu0  ;;  %v6133_v57 = vmax.f32 %v3346_v50, 0.0 }
 0x5c4   : > { %v3347_v54 = vadd.f32 %v3343_v52, %v3324_v53  ;;  %3355 = vrot.lane.b32.xlu1 %v6129_v48, %s5421_s25  ;;  %v3326_v55 = vpop.f32.mrb[5].mxu0 }
 0x5c5   : > { %v3348_v56 = vadd.f32 %v3343_v52, %v3326_v55 }
 0x5c6   : > { %v6135_v58 = vmax.f32 %v3347_v54, 0.0 }
 0x5c7   : > { %v6137_v60 = vmax.f32 %v3348_v56, 0.0 }
 0x5c8   : > { %3359 = vrot.lane.b32.xlu1 %v6133_v57, %s5421_s25  ;;  %3357 = vrot.lane.b32.xlu0 %v6135_v58, %s5421_s25  ;;  %v5255_v62 = vpack.c.bf16 %v6135_v58, %v6129_v48 }
 0x5c9   : > { %v5253_v63 = vpack.c.bf16 %v6137_v60, %v6133_v57 }
 0x5cc   : > { %3521 = vrot.lane.b32.xlu1 %v6129_v48, %s5422_s26  ;;  %3361 = vrot.lane.b32.xlu0 %v6137_v60, %s5421_s25 }
 0x5d0   : > { %3525 = vrot.lane.b32.xlu1 %v6133_v57, %s5422_s26  ;;  %3523 = vrot.lane.b32.xlu0 %v6135_v58, %s5422_s26 }
 0x5d4   : > { %3615 = vrot.lane.b32.xlu1 %v6129_v48, %s5423_s27  ;;  %3527 = vrot.lane.b32.xlu0 %v6137_v60, %s5422_s26 }
 0x5d8   : > { %3619 = vrot.lane.b32.xlu1 %v6133_v57, %s5423_s27  ;;  %3617 = vrot.lane.b32.xlu0 %v6135_v58, %s5423_s27 }
 0x5dc   : > { %3709 = vrot.lane.b32.xlu1 %v6129_v48, %s5424_s28  ;;  %3621 = vrot.lane.b32.xlu0 %v6137_v60, %s5423_s27 }
 0x5e0   : > { %3713 = vrot.lane.b32.xlu1 %v6133_v57, %s5424_s28  ;;  %3711 = vrot.lane.b32.xlu0 %v6135_v58, %s5424_s28 }
 0x5e4   : > { %3803 = vrot.lane.b32.xlu1 %v6129_v48, %s6509_s22  ;;  %3715 = vrot.lane.b32.xlu0 %v6137_v60, %s5424_s28  ;;  %s6512_s28 = smov 111  }
 0x5e8   : > { %3807 = vrot.lane.b32.xlu1 %v6133_v57, %s6509_s22  ;;  %3805 = vrot.lane.b32.xlu0 %v6135_v58, %s6509_s22 }
 0x5ec   : > { %3897 = vrot.lane.b32.xlu1 %v6129_v48, %s6510_s23  ;;  %3809 = vrot.lane.b32.xlu0 %v6137_v60, %s6509_s22 }
 0x5f0   : > { %3901 = vrot.lane.b32.xlu1 %v6133_v57, %s6510_s23  ;;  %3899 = vrot.lane.b32.xlu0 %v6135_v58, %s6510_s23 }
 0x5f4   : > { %3991 = vrot.lane.b32.xlu1 %v6129_v48, %s6511_s21  ;;  %3903 = vrot.lane.b32.xlu0 %v6137_v60, %s6510_s23 }
 0x5f8   : > { %3995 = vrot.lane.b32.xlu1 %v6133_v57, %s6511_s21  ;;  %3993 = vrot.lane.b32.xlu0 %v6135_v58, %s6511_s21 }
 0x5fc   : > { %4085 = vrot.lane.b32.xlu1 %v6129_v48, %s6512_s28  ;;  %3997 = vrot.lane.b32.xlu0 %v6137_v60, %s6511_s21  ;;  %v5212_v48 = vld [vmem:[%s6494_s10 + $0x20] sm:$0xff] }
 0x600   : > { %4089 = vrot.lane.b32.xlu1 %v6133_v57, %s6512_s28  ;;  %4087 = vrot.lane.b32.xlu0 %v6135_v58, %s6512_s28 }
 0x604   : > { %4257 = vrot.lane.b32.xlu1 %v5895_v3, %s5421_s25  ;;  %4091 = vrot.lane.b32.xlu0 %v6137_v60, %s6512_s28 }
 0x608   : > { %4342 = vrot.lane.b32.xlu1 %v5895_v3, %s5422_s26  ;;  %4259 = vrot.lane.b32.xlu0 %v5897_v4, %s5421_s25 }
 0x60c   : > { %4428 = vrot.lane.b32.xlu1 %v5895_v3, %s5423_s27  ;;  %4344 = vrot.lane.b32.xlu0 %v5897_v4, %s5422_s26 }
 0x610   : > { %4674 = vrot.lane.b32.xlu1 %v5895_v3, %s6510_s23  ;;  %4430 = vrot.lane.b32.xlu0 %v5897_v4, %s5423_s27 }
 0x614   : > { %4760 = vrot.lane.b32.xlu1 %v5895_v3, %s6511_s21  ;;  %4676 = vrot.lane.b32.xlu0 %v5897_v4, %s6510_s23 }
 0x618   : > { %4846 = vrot.lane.b32.xlu1 %v5895_v3, %s6512_s28  ;;  %4762 = vrot.lane.b32.xlu0 %v5897_v4, %s6511_s21 }
 0x61c   : > { %4935 = vperm.xlu1 %5410, %v4932_v1   ;;  %4848 = vrot.lane.b32.xlu0 %v5897_v4, %s6512_s28 }
 0x620   : > { %4946 = vperm.xlu0 %5409, %v4943_v2  }
 0x636   : > { %v3356_v5 = vpop.permute.xlu1 %3355 }
 0x63a   : > { %v3360_v10 = vpop.permute.xlu1 %3359  ;;  %v3358_v12 = vpop.permute.xlu0 %3357 }
 0x63b   : > { %v3363_v13 = vsel %vm513_vm0, %v3356_v5, %v3360_v10  ;;  %v3365_v19 = vsel %vm513_vm0, %v3360_v10, %v3356_v5 }
 0x63c   : > { %v3367_v26 = vmul.f32 %v3365_v19, %v5581_v14  ;;  %v3368_v27 = vmul.f32 %v3363_v13, %v5584_v15 }
 0x63e   : > { %v3522_v20 = vpop.permute.xlu1 %3521  ;;  %v3362_v21 = vpop.permute.xlu0 %3361 }
 0x63f   : > { %v3364_v23 = vsel %vm513_vm0, %v3358_v12, %v3362_v21  ;;  %v3366_v25 = vsel %vm513_vm0, %v3362_v21, %v3358_v12 }
 0x640   : > { %v3369_v28 = vmul.f32 %v3366_v25, %v5581_v14  ;;  %v3370_v34 = vmul.f32 %v3364_v23, %v5584_v15  ;;  %v5215_v23 = vld [vmem:[%s6494_s10 + $0x8] sm:$0xff] }
 0x642   : > { %v5251_v35 = vpack.c.bf16 %v3369_v28, %v3367_v26  ;;  %v3526_v9 = vpop.permute.xlu1 %3525  ;;  %v3524_v36 = vpop.permute.xlu0 %3523  ;;  %v5249_v37 = vpack.c.bf16 %v3370_v34, %v3368_v27 }
 0x643   : > { %v3529_v38 = vsel %vm695_vm1, %v3522_v20, %v3526_v9  ;;  %v3531_v47 = vsel %vm695_vm1, %v3526_v9, %v3522_v20 }
 0x644   : > { %5250 = vmatprep.subr.bf16.mxu1 %v5249_v37  ;;  %v3534_v44 = vmul.f32 %v3529_v38, %v5588_v17  ;;  %v3533_v55 = vmul.f32 %v3531_v47, %v5611_v29 }
 0x645   : > { %5252 = vmatpush1.bf16.msra.mxu1 %v5251_v35 }
 0x646   : > { %v3616_v8 = vpop.permute.xlu1 %3615  ;;  %5254 = vmatprep.subr.bf16.mxu1 %v5253_v63  ;;  %v3528_v42 = vpop.permute.xlu0 %3527 }
 0x647   : > { %v3530_v43 = vsel %vm695_vm1, %v3524_v36, %v3528_v42  ;;  %v3532_v45 = vsel %vm695_vm1, %v3528_v42, %v3524_v36 }
 0x648   : > { %v3536_v46 = vmul.f32 %v3530_v43, %v5588_v17  ;;  %5213 = vmatmul.mubr.msk.f32.vlgmr.msra.gmra.mrb[2].mxu1 %vm3372_vm11, %v3371_v40  ;;  %v3535_v54 = vmul.f32 %v3532_v45, %v5611_v29 }
 0x649   : > { %5256 = vmatpush1.bf16.msra.mxu1 %v5255_v62  ;;  %3514 = vmatprep.mubr.f32.mxu1 %v5420_v0 }
 0x64a   : > { %v3620_v50 = vpop.permute.xlu1 %3619  ;;  %v3618_v52 = vpop.permute.xlu0 %3617  ;;  %v5257_v53 = vpack.c.bf16 %v3536_v46, %v3534_v44  ;;  %v5259_v60 = vpack.c.bf16 %v3535_v54, %v3533_v55  ;;  %v5217_v44 = vld [vmem:[%s6494_s10 + $0x10] sm:$0xff] }
 0x64b   : > { %v3623_v56 = vsel %vm801_vm4, %v3616_v8, %v3620_v50  ;;  %v3625_v5 = vsel %vm801_vm4, %v3620_v50, %v3616_v8 }
 0x64c   : > { %5258 = vmatprep.subr.bf16.mxu1 %v5257_v53  ;;  %v3628_v63 = vmul.f32 %v3623_v56, %v5620_v31  ;;  %v3627_v20 = vmul.f32 %v3625_v5, %v5637_v39 }
 0x64e   : > { %v3710_v57 = vpop.permute.xlu1 %3709  ;;  %v3622_v58 = vpop.permute.xlu0 %3621 }
 0x64f   : > { %v3624_v62 = vsel %vm801_vm4, %v3618_v52, %v3622_v58  ;;  %v3626_v1 = vsel %vm801_vm4, %v3622_v58, %v3618_v52 }
 0x650   : > { %v3630_v2 = vmul.f32 %v3624_v62, %v5620_v31  ;;  %5214 = vmatmul.mubr.msk.f32.vlgmr.msra.gmra.mrb[2].mxu1 %vm3372_vm11, %v5212_v48  ;;  %v3629_v19 = vmul.f32 %v3626_v1, %v5637_v39 }
 0x651   : > { %5260 = vmatpush1.bf16.msra.mxu1 %v5259_v60  ;;  %3606 = vmatprep.mubr.f32.mxu1 %v5420_v0 }
 0x652   : > { %v3714_v10 = vpop.permute.xlu1 %3713  ;;  %v3712_v12 = vpop.permute.xlu0 %3711  ;;  %v5261_v13 = vpack.c.bf16 %v3630_v2, %v3628_v63  ;;  %v5263_v27 = vpack.c.bf16 %v3629_v19, %v3627_v20  ;;  %v5219_v63 = vld [vmem:[%s6494_s10 + $0x18] sm:$0xff] }
 0x653   : > { %v3717_v21 = vsel %vm907_vm5, %v3710_v57, %v3714_v10  ;;  %v3719_v36 = vsel %vm907_vm5, %v3714_v10, %v3710_v57 }
 0x654   : > { %5262 = vmatprep.subr.bf16.mxu1 %v5261_v13  ;;  %v3722_v34 = vmul.f32 %v3717_v21, %v5643_v41  ;;  %v3721_v42 = vmul.f32 %v3719_v36, %v5660_v49 }
 0x656   : > { %v3804_v25 = vpop.permute.xlu1 %3803  ;;  %v3716_v26 = vpop.permute.xlu0 %3715 }
 0x657   : > { %v3718_v28 = vsel %vm907_vm5, %v3712_v12, %v3716_v26  ;;  %v3720_v35 = vsel %vm907_vm5, %v3716_v26, %v3712_v12 }
 0x658   : > { %v3724_v9 = vmul.f32 %v3718_v28, %v5643_v41  ;;  %5216 = vmatmul.mubr.msk.f32.vlgmr.msra.gmra.mrb[2].mxu1 %vm3372_vm11, %v5215_v23  ;;  %v3723_v8 = vmul.f32 %v3720_v35, %v5660_v49 }
 0x659   : > { %5264 = vmatpush1.bf16.msra.mxu1 %v5263_v27  ;;  %3700 = vmatprep.mubr.f32.mxu1 %v5420_v0 }
 0x65a   : > { %v3808_v37 = vpop.permute.xlu1 %3807  ;;  %v3806_v38 = vpop.permute.xlu0 %3805  ;;  %v5265_v40 = vpack.c.bf16 %v3724_v9, %v3722_v34  ;;  %v5267_v47 = vpack.c.bf16 %v3723_v8, %v3721_v42  ;;  %v5221_v34 = vld [vmem:[%s6494_s10 + $0x28] sm:$0xff] }
 0x65b   : > { %v3813_v43 = vsel %vm1013_vm6, %v3808_v37, %v3804_v25  ;;  %v3811_v55 = vsel %vm1013_vm6, %v3804_v25, %v3808_v37 }
 0x65c   : > { %5266 = vmatprep.subr.bf16.mxu1 %v5265_v40  ;;  %v3816_v52 = vmul.f32 %v3813_v43, %v5666_v51  ;;  %v3815_v60 = vmul.f32 %v3811_v55, %v5683_v59 }
 0x65e   : > { %v3898_v45 = vpop.permute.xlu1 %3897  ;;  %v3810_v46 = vpop.permute.xlu0 %3809 }
 0x65f   : > { %v3814_v50 = vsel %vm1013_vm6, %v3810_v46, %v3806_v38  ;;  %v3812_v53 = vsel %vm1013_vm6, %v3806_v38, %v3810_v46 }
 0x660   : > { %v3818_v54 = vmul.f32 %v3814_v50, %v5666_v51  ;;  %5218 = vmatmul.mubr.msk.f32.vlgmr.msra.gmra.mrb[2].mxu1 %vm3372_vm11, %v5217_v44  ;;  %v3817_v58 = vmul.f32 %v3812_v53, %v5683_v59 }
 0x661   : > { %5268 = vmatpush1.bf16.msra.mxu1 %v5267_v47  ;;  %3794 = vmatprep.mubr.f32.mxu1 %v5420_v0 }
 0x662   : > { %v3902_v56 = vpop.permute.xlu1 %3901  ;;  %v3900_v48 = vpop.permute.xlu0 %3899  ;;  %v5269_v57 = vpack.c.bf16 %v3818_v54, %v3816_v52  ;;  %v5271_v5 = vpack.c.bf16 %v3817_v58, %v3815_v60  ;;  %v5223_v52 = vld [vmem:[%s6494_s10 + $0x30] sm:$0xff] }
 0x663   : > { %v3907_v62 = vsel %vm1119_vm7, %v3902_v56, %v3898_v45  ;;  %v3905_v20 = vsel %vm1119_vm7, %v3898_v45, %v3902_v56 }
 0x664   : > { %5270 = vmatprep.subr.bf16.mxu1 %v5269_v57  ;;  %v3910_v12 = vmul.f32 %v3907_v62, %v5689_v61  ;;  %v3909_v27 = vmul.f32 %v3905_v20, %v5706_v6 }
 0x666   : > { %v3992_v1 = vpop.permute.xlu1 %3991  ;;  %v3904_v2 = vpop.permute.xlu0 %3903 }
 0x667   : > { %v3908_v10 = vsel %vm1119_vm7, %v3904_v2, %v3900_v48  ;;  %v3906_v13 = vsel %vm1119_vm7, %v3900_v48, %v3904_v2 }
 0x668   : > { %v3912_v19 = vmul.f32 %v3908_v10, %v5689_v61  ;;  %5220 = vmatmul.mubr.msk.f32.vlgmr.msra.gmra.mrb[2].mxu1 %vm3372_vm11, %v5219_v63  ;;  %v3911_v26 = vmul.f32 %v3906_v13, %v5706_v6  ;;  %v5227_v13 = vld [vmem:[%s6494_s10 + $0x40] sm:$0xff] }
 0x669   : > { %5272 = vmatpush1.bf16.msra.mxu1 %v5271_v5  ;;  %3888 = vmatprep.mubr.f32.mxu1 %v5420_v0 }
 0x66a   : > { %v3996_v21 = vpop.permute.xlu1 %3995  ;;  %v3994_v23 = vpop.permute.xlu0 %3993  ;;  %v5273_v25 = vpack.c.bf16 %v3912_v19, %v3910_v12  ;;  %v5275_v36 = vpack.c.bf16 %v3911_v26, %v3909_v27 }
 0x66b   : > { %v4001_v28 = vsel %vm1225_vm8, %v3996_v21, %v3992_v1  ;;  %v3999_v42 = vsel %vm1225_vm8, %v3992_v1, %v3996_v21  ;;  %v5225_v1 = vld [vmem:[%s6494_s10 + $0x38] sm:$0xff] }
 0x66c   : > { %5274 = vmatprep.subr.bf16.mxu1 %v5273_v25  ;;  %v4004_v38 = vmul.f32 %v4001_v28, %v5712_v11  ;;  %v4003_v47 = vmul.f32 %v3999_v42, %v5729_v22  ;;  %v5229_v25 = vld [vmem:[%s6495_s11 + $0x20] sm:$0xff] }
 0x66e   : > { %v4086_v35 = vpop.permute.xlu1 %4085  ;;  %v3998_v9 = vpop.permute.xlu0 %3997 }
 0x66f   : > { %v4002_v37 = vsel %vm1225_vm8, %v3998_v9, %v3994_v23  ;;  %v4000_v40 = vsel %vm1225_vm8, %v3994_v23, %v3998_v9 }
 0x670   : > { %v4006_v8 = vmul.f32 %v4002_v37, %v5712_v11  ;;  %5222 = vmatmul.mubr.msk.f32.vlgmr.msra.gmra.mrb[2].mxu1 %vm3372_vm11, %v5221_v34  ;;  %v4005_v46 = vmul.f32 %v4000_v40, %v5729_v22  ;;  %v4595_v40 = vmul.f32 %v5916_v18, %v5666_v51 }
 0x671   : > { %5276 = vmatpush1.bf16.msra.mxu1 %v5275_v36  ;;  %3982 = vmatprep.mubr.f32.mxu1 %v5420_v0  ;;  %v5232_v36 = vld [vmem:[%s6495_s11 + $0x8] sm:$0xff] }
 0x672   : > { %v4090_v43 = vpop.permute.xlu1 %4089  ;;  %v4088_v44 = vpop.permute.xlu0 %4087  ;;  %v5277_v45 = vpack.c.bf16 %v4006_v8, %v4004_v38  ;;  %v5279_v54 = vpack.c.bf16 %v4005_v46, %v4003_v47  ;;  %v4514_v38 = vmul.f32 %v5932_v33, %v5660_v49  ;;  %v5236_v8 = vld [vmem:[%s6495_s11 + $0x18] sm:$0xff]  ;;  %v4594_v49 = vmul.f32 %v5912_v16, %v5683_v59  ;;  %v5238_v59 = vld [vmem:[%s6495_s11 + $0x28] sm:$0xff] }
 0x673   : > { %v4095_v50 = vsel %vm1331_vm9, %v4090_v43, %v4086_v35  ;;  %v4093_v58 = vsel %vm1331_vm9, %v4086_v35, %v4090_v43 }
 0x674   : > { %5278 = vmatprep.subr.bf16.mxu1 %v5277_v45  ;;  %v4098_v56 = vmul.f32 %v4095_v50, %v5735_v24  ;;  %v4097_v63 = vmul.f32 %v4093_v58, %v5748_v30 }
 0x676   : > { %v4092_v53 = vpop.permute.xlu0 %4091  ;;  %v4258_v10 = vpop.permute.xlu1 %4257 }
 0x677   : > { %v4096_v55 = vsel %vm1331_vm9, %v4092_v53, %v4088_v44  ;;  %v4094_v48 = vsel %vm1331_vm9, %v4088_v44, %v4092_v53  ;;  %v5242_v53 = vld [vmem:[%s6495_s11 + $0x38] sm:$0xff] }
 0x678   : > { %v4100_v57 = vmul.f32 %v4096_v55, %v5735_v24  ;;  %5224 = vmatmul.mubr.msk.f32.vlgmr.msra.gmra.mrb[2].mxu1 %vm3372_vm11, %v5223_v52  ;;  %v4099_v62 = vmul.f32 %v4094_v48, %v5748_v30 }
 0x679   : > { %5280 = vmatpush1.bf16.msra.mxu1 %v5279_v54  ;;  %4076 = vmatprep.mubr.f32.mxu1 %v5420_v0 }
 0x67a   : > { %v5281_v60 = vpack.c.bf16 %v4100_v57, %v4098_v56  ;;  %v5283_v2 = vpack.c.bf16 %v4099_v62, %v4097_v63  ;;  %v4260_v5 = vpop.permute.xlu0 %4259  ;;  %v4343_v21 = vpop.permute.xlu1 %4342 }
 0x67b   : > { %v4261_v12 = vsel %vm513_vm0, %v4258_v10, %v4260_v5 }
 0x67c   : > { %5282 = vmatprep.subr.bf16.mxu1 %v5281_v60  ;;  %v4264_v19 = vmul.f32 %v4261_v12, %v5584_v15 }
 0x67e   : > { %v4345_v20 = vpop.permute.xlu0 %4344  ;;  %v4429_v27 = vpop.permute.xlu1 %4428 }
 0x67f   : > { %v4346_v23 = vsel %vm695_vm1, %v4343_v21, %v4345_v20  ;;  %v4347_v28 = vsel %vm695_vm1, %v4345_v20, %v4343_v21 }
 0x680   : > { %5226 = vmatmul.mubr.msk.f32.vlgmr.msra.gmra.mrb[2].mxu1 %vm3372_vm11, %v5225_v1  ;;  %v4349_v26 = vmul.f32 %v4346_v23, %v5588_v17  ;;  %v4348_v17 = vmul.f32 %v4347_v28, %v5611_v29  ;;  %v4515_v29 = vmul.f32 %v5928_v32, %v5643_v41 }
 0x681   : > { %5284 = vmatpush1.bf16.msra.mxu1 %v5283_v2  ;;  %4170 = vmatprep.mubr.f32.mxu1 %v5420_v0 }
 0x682   : > { %4184 = vmatprep.subr.mxu1 %v5897_v4  ;;  %v4262_v4 = vsel %vm513_vm0, %v4260_v5, %v4258_v10  ;;  %v4675_v41 = vpop.permute.xlu1 %4674 }
 0x683   : > { %v4263_v15 = vmul.f32 %v4262_v4, %v5581_v14  ;;  %v4265_v14 = vld [vmem:[%s6495_s11] sm:$0xff] }
 0x686   : > { %v4761_v33 = vpop.permute.xlu1 %4760 }
 0x688   : > { %5228 = vmatmul.mubr.msk.f32.vlgmr.msra.gmra.mrb[2].mxu1 %vm3372_vm11, %v5227_v13 }
 0x689   : > { %4185 = vmatpush1.msra.mxu1 %v5895_v3  ;;  %4248 = vmatprep.mubr.f32.mxu1 %v5420_v0  ;;  %v4431_v3 = vpop.permute.xlu0 %4430 }
 0x68a   : > { %4269 = vmatprep.subr.mxu1 %v4264_v19  ;;  %v4432_v34 = vsel %vm801_vm4, %v4429_v27, %v4431_v3  ;;  %v4433_v9 = vsel %vm801_vm4, %v4431_v3, %v4429_v27  ;;  %v4847_v45 = vpop.permute.xlu1 %4846 }
 0x68b   : > { %v4435_v35 = vmul.f32 %v4432_v34, %v5620_v31  ;;  %v4434_v37 = vmul.f32 %v4433_v9, %v5637_v39  ;;  %v5234_v31 = vld [vmem:[%s6495_s11 + $0x10] sm:$0xff] }
 0x68d   : > { %v4677_v39 = vpop.permute.xlu0 %4676 }
 0x68e   : > { %v4679_v32 = vsel %vm1119_vm7, %v4677_v39, %v4675_v41  ;;  %v4678_v42 = vsel %vm1119_vm7, %v4675_v41, %v4677_v39 }
 0x68f   : > { %v4681_v51 = vmul.f32 %v4679_v32, %v5689_v61  ;;  %v4680_v61 = vmul.f32 %v4678_v42, %v5706_v6  ;;  %v5240_v6 = vld [vmem:[%s6495_s11 + $0x30] sm:$0xff] }
 0x690   : > { %5230 = vmatmul.mubr.msk.f32.vlgmr.msra.gmra.mrb[2].mxu1 %vm2382_vm12, %v5229_v25 }
 0x691   : > { %4270 = vmatpush1.msra.mxu1 %v4263_v15  ;;  %4333 = vmatprep.mubr.f32.mxu1 %v5420_v0  ;;  %v4763_v18 = vpop.permute.xlu0 %4762 }
 0x692   : > { %4355 = vmatprep.subr.mxu1 %v4349_v26  ;;  %v4765_v43 = vsel %vm1225_vm8, %v4763_v18, %v4761_v33  ;;  %v4764_v46 = vsel %vm1225_vm8, %v4761_v33, %v4763_v18 }
 0x693   : > { %v4767_v16 = vmul.f32 %v4765_v43, %v5712_v11  ;;  %v4766_v11 = vmul.f32 %v4764_v46, %v5729_v22  ;;  %v5244_v22 = vld [vmem:[%s6495_s11 + $0x40] sm:$0xff] }
 0x695   : > { %v4849_v44 = vpop.permute.xlu0 %4848 }
 0x696   : > { %v4851_v47 = vsel %vm1331_vm9, %v4849_v44, %v4847_v45  ;;  %v4850_v52 = vsel %vm1331_vm9, %v4847_v45, %v4849_v44 }
 0x697   : > { %v4853_v50 = vmul.f32 %v4851_v47, %v5735_v24  ;;  %v4852_v54 = vmul.f32 %v4850_v52, %v5748_v30  ;;  %v4942_v30 = vld [vmem:[%s6497_s13] sm:$0xf] }
 0x698   : > { %5231 = vmatmul.mubr.msk.f32.vlgmr.msra.gmra.mrb[2].mxu1 %vm2382_vm12, %v4265_v14 }
 0x699   : > { %4356 = vmatpush1.msra.mxu1 %v4348_v17  ;;  %4419 = vmatprep.mubr.f32.mxu1 %v5420_v0 }
 0x69a   : > { %4441 = vmatprep.subr.mxu1 %v4435_v35 }
 0x69b   : > { %v4936_v24 = vpop.permute.xlu1 %4935 }
 0x6a0   : > { %5233 = vmatmul.mubr.msk.f32.vlgmr.msra.gmra.mrb[2].mxu1 %vm2382_vm12, %v5232_v36 }
 0x6a1   : > { %4442 = vmatpush1.msra.mxu1 %v4434_v37  ;;  %4505 = vmatprep.mubr.f32.mxu1 %v5420_v0 }
 0x6a2   : > { %4521 = vmatprep.subr.mxu1 %v4515_v29 }
 0x6a8   : > { %5235 = vmatmul.mubr.msk.f32.vlgmr.msra.gmra.mrb[2].mxu1 %vm2382_vm12, %v5234_v31 }
 0x6a9   : > { %4522 = vmatpush1.msra.mxu1 %v4514_v38  ;;  %4585 = vmatprep.mubr.f32.mxu1 %v5420_v0 }
 0x6aa   : > { %4601 = vmatprep.subr.mxu1 %v4595_v40 }
 0x6b0   : > { %5237 = vmatmul.mubr.msk.f32.vlgmr.msra.gmra.mrb[2].mxu1 %vm2382_vm12, %v5236_v8 }
 0x6b1   : > { %4602 = vmatpush1.msra.mxu1 %v4594_v49  ;;  %4665 = vmatprep.mubr.f32.mxu1 %v5420_v0 }
 0x6b2   : > { %4687 = vmatprep.subr.mxu1 %v4681_v51 }
 0x6b8   : > { %5239 = vmatmul.mubr.msk.f32.vlgmr.msra.gmra.mrb[2].mxu1 %vm2382_vm12, %v5238_v59 }
 0x6b9   : > { %4688 = vmatpush1.msra.mxu1 %v4680_v61  ;;  %4751 = vmatprep.mubr.f32.mxu1 %v5420_v0 }
 0x6ba   : > { %4773 = vmatprep.subr.mxu1 %v4767_v16 }
 0x6c0   : > { %5241 = vmatmul.mubr.msk.f32.vlgmr.msra.gmra.mrb[2].mxu1 %vm2382_vm12, %v5240_v6 }
 0x6c1   : > { %4774 = vmatpush1.msra.mxu1 %v4766_v11  ;;  %4837 = vmatprep.mubr.f32.mxu1 %v5420_v0 }
 0x6c2   : > { %4859 = vmatprep.subr.mxu1 %v4853_v50 }
 0x6c8   : > { %5243 = vmatmul.mubr.msk.f32.vlgmr.msra.gmra.mrb[2].mxu1 %vm2382_vm12, %v5242_v53 }
 0x6c9   : > { %4860 = vmatpush1.msra.mxu1 %v4852_v54  ;;  %4923 = vmatprep.mubr.f32.mxu1 %v5420_v0  ;;  %v4947_v0 = vpop.permute.xlu0 %4946 }
 0x6d0   : > { %5245 = vmatmul.mubr.msk.f32.vlgmr.msra.gmra.mrb[2].mxu1 %vm2382_vm12, %v5244_v22 }
 0x7a3   : > { %v4925_v7 = vpop.f32.mrb[2].mxu1 }
 0x7a4   : > { %v4938_v55 = vadd.f32 %v4936_v24, %v4925_v7  ;;  %v4927_v56 = vpop.f32.mrb[3].mxu1 }
 0x7a5   : > { %v4939_v48 = vadd.f32 %v4936_v24, %v4927_v56 }
 0x7a6   : > { %v4940_v58 = vmax.f32 %v4938_v55, 0.0 }
 0x7a7   : > { %v4941_v57 = vmax.f32 %v4939_v48, 0.0 }
 0x7a9   : > { %4952 = vmatprep.subr.mxu0 %v4941_v57 }
 0x7aa   : > { %4953 = vmatpush1.msra.mxu0 %v4940_v58 }
 0x7ab   : > { %5246 = vmatmul.mubr.msk.f32.vlgmr.msra.gmra.mrb[6].mxu0 %vm2382_vm12, %v4942_v30 }
 0x87e   : > { %v5018_v60 = vpop.f32.mrb[6].mxu0 }
 0x87f   : > { %v5019_v62 = vadd.f32 %v5018_v60, %v4947_v0  ;;  %v5020_v63 = vpop.f32.mrb[7].mxu0 }
 0x880   : > { %v5021_v1 = vadd.f32 %v5020_v63, %v4947_v0 }
 0x882   : > { %v5025_v2 = vcombine.low %v5019_v62, %v5021_v1 }
 0x884   : > { %5027 = vst [vmem:[%s496_s29] sm:$0xff] %v5025_v2 }
 0x885 PF: > { %s25_s18 = sadd.s32 1, %s5418_s18  }
 0x886   : > { %p22_p4 = scmp.ge.s32.totalorder %s25_s18, 4  }
 0x888   :  { %24 = sbr.rel (!%p22_p4) target bundleno = 1 (0x1), region = 165 }

</bundles_post_ra>
